<compile_context>
chip_gen: v5e
topology: v5e:2x2
jax: 0.10.0
libtpu: 0.0.40
codegen_flags: <defaults>
</compile_context>

<pallas_src>
import functools
import math

import jax
import jax.numpy as jnp
from jax.experimental import pallas as pl
from jax.experimental.pallas import tpu as pltpu


# ----------------------------------------------------------------------------
# Pallas kernel: one group of WB windows per grid step.
# ----------------------------------------------------------------------------
def _window_attn_kernel(x_ref, wqkv_ref, bqkv_ref, wproj_ref, bproj_ref,
                        bias_ref, o_ref, *, num_heads, head_dim):
    C = num_heads * head_dim

    # qkv projection for the whole window group: (M, C) @ (C, 3C) on the MXU.
    # The q-scale is already folded into the q columns of wqkv / bqkv.
    x = x_ref[0]                                                  # bf16 (M, C)
    qkv = jnp.dot(x, wqkv_ref[...], preferred_element_type=jnp.float32)
    qkv = qkv + bqkv_ref[0]                                       # f32 (M, 3C)
    qkv_bf = qkv.astype(jnp.bfloat16)                             # one cast

    # Per-head attention with block-diagonal window packing.  q/k/v are column
    # slices of qkv (no transposes); bias_ref already holds rel-pos bias + mask
    # on the diagonal N x N blocks and -1e9 on the off-diagonal blocks.
    head_outs = []
    for h in range(num_heads):
        lo = h * head_dim
        qh = qkv_bf[:, 0 * C + lo: 0 * C + lo + head_dim]
        kh = qkv_bf[:, 1 * C + lo: 1 * C + lo + head_dim]
        vh = qkv_bf[:, 2 * C + lo: 2 * C + lo + head_dim]

        # (M, hd) @ (M, hd)^T -> (M, M) scores (f32 accumulation).
        s = jnp.einsum('md,nd->mn', qh, kh,
                       preferred_element_type=jnp.float32)
        s = s + bias_ref[0, h]                                    # f32

        # softmax over the last (lane-dense) axis, f32 math.
        m = jnp.max(s, axis=-1, keepdims=True)
        e = jnp.exp(s - m)
        denom = jnp.sum(e, axis=-1, keepdims=True)
        p = e * pl.reciprocal(denom, approx=True)

        # (M, M) @ (M, hd) -> (M, hd)
        head_outs.append(jnp.dot(p.astype(jnp.bfloat16), vh,
                                 preferred_element_type=jnp.float32))

    out = jnp.concatenate(head_outs, axis=-1)                     # (M, C) f32

    # Output projection for the whole group.
    y = jnp.dot(out.astype(jnp.bfloat16), wproj_ref[...],
                preferred_element_type=jnp.float32)
    y = y + bproj_ref[0]
    o_ref[0] = y.astype(o_ref.dtype)


# ----------------------------------------------------------------------------
# Glue: parameter init, relative-position-index gather, pallas_call wrapper.
# ----------------------------------------------------------------------------
def init_window_attention_params(key, dim, window_size, num_heads,
                                 dtype=jnp.float32):
    Wh, Ww = window_size
    k0, k1, k2, k3, k4 = jax.random.split(key, 5)
    table_size = (2 * Wh - 1) * (2 * Ww - 1)
    return {
        # trunc_normal_(std=0.02), truncated at +/- 2 std
        "rel_pos_bias_table": 0.02 * jax.random.truncated_normal(
            k0, -2.0, 2.0, (table_size, num_heads), dtype),
        # nn.Linear(dim, 3*dim): weight (3C, C), bias (3C,)
        "qkv_w": 0.05 * jax.random.normal(k1, (3 * dim, dim), dtype),
        "qkv_b": 0.05 * jax.random.normal(k2, (3 * dim,), dtype),
        # nn.Linear(dim, dim)
        "proj_w": 0.05 * jax.random.normal(k3, (dim, dim), dtype),
        "proj_b": 0.05 * jax.random.normal(k4, (dim,), dtype),
    }


def _relative_position_index(window_size):
    Wh, Ww = window_size
    coords = jnp.stack(jnp.meshgrid(jnp.arange(Wh), jnp.arange(Ww),
                                    indexing='ij'))               # (2, Wh, Ww)
    cf = coords.reshape(2, -1)                                    # (2, N)
    rel = cf[:, :, None] - cf[:, None, :]                         # (2, N, N)
    rel = rel.transpose(1, 2, 0)                                  # (N, N, 2)
    rel = rel.at[:, :, 0].add(Wh - 1)
    rel = rel.at[:, :, 1].add(Ww - 1)
    rel = rel.at[:, :, 0].multiply(2 * Ww - 1)
    return rel.sum(-1)                                            # (N, N)


def _choose_window_block(B_, N, target_rows=128):
    """Largest WB dividing B_ with WB*N near `target_rows` (>= 1)."""
    wb = max(1, min(B_, max(1, target_rows // N)))
    while wb > 1 and B_ % wb != 0:
        wb -= 1
    return wb


def window_attention(x, params, window_size, num_heads, mask=None,
                     window_block=None):
    """Pallas implementation of WindowAttention.forward.

    x:    (B_, N, C) float32, N == window_size[0]*window_size[1]
    mask: optional (nW, N, N) additive mask (0 / large-negative), B_ % nW == 0
    """
    B_, N, C = x.shape
    Wh, Ww = window_size
    assert N == Wh * Ww and C % num_heads == 0
    head_dim = C // num_heads
    scale = float(head_dim) ** (-0.5)
    out_dtype = x.dtype

    # ---- window batching ----------------------------------------------------
    WB = window_block if window_block is not None else _choose_window_block(B_, N)
    assert B_ % WB == 0
    G = B_ // WB
    M = WB * N                                    # rows per grid step

    # ---- relative position bias (table gather done once, plain JAX) ---------
    rpi = _relative_position_index(window_size).reshape(-1)           # (N*N,)
    rel_bias = params["rel_pos_bias_table"][rpi]                      # (N*N, nH)
    rel_bias = rel_bias.reshape(N, N, num_heads).transpose(2, 0, 1)   # (nH,N,N)
    rel_bias = rel_bias.astype(jnp.float32)

    # ---- fold rel-pos bias + shift mask + block-diagonal packing mask -------
    # Group g holds windows b = g*WB + j, whose mask index is b % nW.  The
    # per-group bias pattern only depends on (g*WB) % nW, so there are
    # P = nW / gcd(nW, WB) distinct patterns (P == 1 when mask is None).
    NEG = -1e9
    if mask is None:
        n_we, d, P = 1, 1, 1
    else:
        n_we = mask.shape[0]
        assert B_ % n_we == 0
        d = math.gcd(n_we, WB)
        P = n_we // d

    bias = jnp.full((P, num_heads, M, M), NEG, dtype=jnp.float32)
    for p in range(P):
        for j in range(WB):
            blk = rel_bias
            if mask is not None:
                mi = (p * d + j) % n_we
                blk = blk + mask[mi][None].astype(jnp.float32)
            bias = bias.at[p, :, j * N:(j + 1) * N, j * N:(j + 1) * N].set(blk)

    if mask is None:
        bias_index = lambda g: (0, 0, 0, 0)               # resident in VMEM
    else:
        bias_index = lambda g: (((g * WB) % n_we) // d, 0, 0, 0)

    # ---- weights (transposed so the kernel does x @ W; bf16 for the MXU) ----
    # Fold the q scale into the q columns of the qkv weight / bias: removes a
    # per-head (M, M) VPU multiply from the kernel.
    scale_vec = jnp.concatenate([jnp.full((C,), scale, jnp.float32),
                                 jnp.ones((2 * C,), jnp.float32)])
    wqkv = (params["qkv_w"].T.astype(jnp.float32)
            * scale_vec[None, :]).astype(jnp.bfloat16)             # (C, 3C)
    bqkv = (params["qkv_b"].astype(jnp.float32)
            * scale_vec).reshape(1, 3 * C)
    wproj = params["proj_w"].T.astype(jnp.bfloat16)                # (C, C)
    bproj = params["proj_b"].reshape(1, C).astype(jnp.float32)

    # Window-group slabs; cast to bf16 on the host (halves input DMA bytes —
    # the kernel feeds the MXU in bf16 anyway).
    x_g = x.reshape(G, M, C).astype(jnp.bfloat16)

    kernel = functools.partial(_window_attn_kernel, num_heads=num_heads,
                               head_dim=head_dim)

    grid_spec = pltpu.PrefetchScalarGridSpec(
        num_scalar_prefetch=0,
        grid=(G,),
        in_specs=[
            pl.BlockSpec((1, M, C), lambda g: (g, 0, 0)),              # x
            pl.BlockSpec((C, 3 * C), lambda g: (0, 0)),                # Wqkv
            pl.BlockSpec((1, 3 * C), lambda g: (0, 0)),                # bqkv
            pl.BlockSpec((C, C), lambda g: (0, 0)),                    # Wproj
            pl.BlockSpec((1, C), lambda g: (0, 0)),                    # bproj
            pl.BlockSpec((1, num_heads, M, M), bias_index),            # bias
        ],
        out_specs=pl.BlockSpec((1, M, C), lambda g: (g, 0, 0)),
    )

    out = pl.pallas_call(
        kernel,
        out_shape=jax.ShapeDtypeStruct((G, M, C), out_dtype),
        grid_spec=grid_spec,
        compiler_params=pltpu.CompilerParams(
            dimension_semantics=("parallel",)),   # megacore sharding on v7x
    )(x_g, wqkv, bqkv, wproj, bproj, bias)

    return out.reshape(B_, N, C)


# ----------------------------------------------------------------------------
# Pure-JAX f32 reference (mirrors the PyTorch forward) for verification.
# ----------------------------------------------------------------------------
def window_attention_ref(x, params, window_size, num_heads, mask=None):
    B_, N, C = x.shape
    hd = C // num_heads
    scale = float(hd) ** (-0.5)

    qkv = x @ params["qkv_w"].T + params["qkv_b"]
    qkv = qkv.reshape(B_, N, 3, num_heads, hd).transpose(2, 0, 3, 1, 4)
    q, k, v = qkv[0], qkv[1], qkv[2]
    q = q * scale
    attn = jnp.einsum('bhqd,bhkd->bhqk', q, k)

    rpi = _relative_position_index(window_size).reshape(-1)
    rel_bias = params["rel_pos_bias_table"][rpi].reshape(N, N, num_heads)
    rel_bias = rel_bias.transpose(2, 0, 1)
    attn = attn + rel_bias[None]

    if mask is not None:
        nW = mask.shape[0]
        attn = attn.reshape(B_ // nW, nW, num_heads, N, N) + mask[None, :, None]
        attn = attn.reshape(-1, num_heads, N, N)

    attn = jax.nn.softmax(attn, axis=-1)
    out = jnp.einsum('bhqk,bhkd->bhqd', attn, v)
    out = out.transpose(0, 2, 1, 3).reshape(B_, N, C)
    return out @ params["proj_w"].T + params["proj_b"]


# ----------------------------------------------------------------------------
if __name__ == "__main__":
    key = jax.random.PRNGKey(0)
    k_param, k_x = jax.random.split(key)

    dim = 32
    window_size = (4, 4)      # N = 16
    num_heads = 4             # head_dim = 8
    B = 4
    nW = 4
    B_ = B * nW               # 16  -> WB=8 windows per grid step, 2 grid steps
    N = window_size[0] * window_size[1]

    params = init_window_attention_params(k_param, dim, window_size, num_heads)
    x = jax.random.normal(k_x, (B_, N, dim), jnp.float32)

    # Per-window shift masks (0 / -100); windows differ to exercise b % nW.
    grp = jnp.arange(N) // 8
    base_mask = jnp.where(grp[:, None] == grp[None, :], 0.0, -100.0)
    mask = jnp.stack([base_mask * float(w % 2) for w in range(nW)]
                     ).astype(jnp.float32)                     # (nW, N, N)

    # No-mask path
    out0 = window_attention(x, params, window_size, num_heads, mask=None)
    ref0 = window_attention_ref(x, params, window_size, num_heads, mask=None)
    jax.block_until_ready(out0)

    # Masked path
    out1 = window_attention(x, params, window_size, num_heads, mask=mask)
    ref1 = window_attention_ref(x, params, window_size, num_heads, mask=mask)
    jax.block_until_ready(out1)

    assert out0.shape == (B_, N, dim) and out1.shape == (B_, N, dim)
    # bf16 MXU inputs + approx reciprocal -> loosen tolerance vs. f32 reference.
    assert jnp.allclose(out0, ref0, rtol=5e-2, atol=5e-2), "no-mask mismatch"
    assert jnp.allclose(out1, ref1, rtol=5e-2, atol=5e-2), "masked mismatch"

    print("KERNEL_OK")
</pallas_src>

<mosaic_0001>
module attributes {stable_mosaic.version = 11 : i64} {
  func.func @_window_attn_kernel(%arg0: i32, %arg1: memref<1x128x32xbf16, #tpu.memory_space<vmem>>, %arg2: memref<32x96xbf16, #tpu.memory_space<vmem>>, %arg3: memref<1x96xf32, #tpu.memory_space<vmem>>, %arg4: memref<32x32xbf16, #tpu.memory_space<vmem>>, %arg5: memref<1x32xf32, #tpu.memory_space<vmem>>, %arg6: memref<1x4x128x128xf32, #tpu.memory_space<vmem>>, %arg7: memref<1x128x32xf32, #tpu.memory_space<vmem>>) attributes {dimension_semantics = [#tpu.dimension_semantics<parallel>], iteration_bounds = array<i64: 2>, scalar_prefetch = 0 : i64, scratch_operands = 0 : i64, tpu.core_type = #tpu.core_type<tc>, window_params = [{transform_indices = @transform_0, window_bounds = array<i64: 1, 128, 32>}, {pipeline_mode = #tpu.pipeline_mode<synchronous>, transform_indices = @transform_1, window_bounds = array<i64: 32, 96>}, {pipeline_mode = #tpu.pipeline_mode<synchronous>, transform_indices = @transform_2, window_bounds = array<i64: 1, 96>}, {pipeline_mode = #tpu.pipeline_mode<synchronous>, transform_indices = @transform_3, window_bounds = array<i64: 32, 32>}, {pipeline_mode = #tpu.pipeline_mode<synchronous>, transform_indices = @transform_4, window_bounds = array<i64: 1, 32>}, {pipeline_mode = #tpu.pipeline_mode<synchronous>, transform_indices = @transform_5, window_bounds = array<i64: 1, 4, 128, 128>}, {transform_indices = @transform_6, window_bounds = array<i64: 1, 128, 32>}]} {
    %c0 = arith.constant 0 : index
    %c0_0 = arith.constant 0 : index
    %c0_1 = arith.constant 0 : index
    %0 = vector.load %arg1[%c0, %c0_0, %c0_1] : memref<1x128x32xbf16, #tpu.memory_space<vmem>>, vector<1x128x32xbf16>
    %1 = vector.shape_cast %0 : vector<1x128x32xbf16> to vector<128x32xbf16>
    %c0_2 = arith.constant 0 : index
    %c0_3 = arith.constant 0 : index
    %2 = vector.load %arg2[%c0_2, %c0_3] : memref<32x96xbf16, #tpu.memory_space<vmem>>, vector<32x96xbf16>
    %cst = arith.constant dense<0.000000e+00> : vector<128x96xf32>
    %3 = tpu.matmul %1, %2, %cst {dimension_numbers = #tpu.dot_dimension_numbers<[1], [0], [0], [1], [0, 0, 1, 1], [], []>} : vector<128x32xbf16>, vector<32x96xbf16>, vector<128x96xf32> -> vector<128x96xf32>
    %c0_4 = arith.constant 0 : index
    %c0_5 = arith.constant 0 : index
    %4 = vector.load %arg3[%c0_4, %c0_5] : memref<1x96xf32, #tpu.memory_space<vmem>>, vector<1x96xf32>
    %5 = vector.shape_cast %4 : vector<1x96xf32> to vector<96xf32>
    %6 = vector.shape_cast %5 : vector<96xf32> to vector<1x96xf32>
    %7 = vector.broadcast %6 : vector<1x96xf32> to vector<128x96xf32>
    %8 = arith.addf %3, %7 : vector<128x96xf32>
    %9 = arith.truncf %8 : vector<128x96xf32> to vector<128x96xbf16>
    %10 = vector.extract_strided_slice %9 {offsets = [0, 0], sizes = [128, 8], strides = [1, 1]} : vector<128x96xbf16> to vector<128x8xbf16>
    %11 = vector.extract_strided_slice %9 {offsets = [0, 32], sizes = [128, 8], strides = [1, 1]} : vector<128x96xbf16> to vector<128x8xbf16>
    %12 = vector.extract_strided_slice %9 {offsets = [0, 64], sizes = [128, 8], strides = [1, 1]} : vector<128x96xbf16> to vector<128x8xbf16>
    "tpu.trace_start"() <{level = 10 : i32, message = "md,nd->mn"}> : () -> ()
    %cst_6 = arith.constant dense<0.000000e+00> : vector<128x128xf32>
    %13 = tpu.matmul %10, %11, %cst_6 {dimension_numbers = #tpu.dot_dimension_numbers<[1], [1], [0], [0], [0, 0, 1, 0], [], []>} : vector<128x8xbf16>, vector<128x8xbf16>, vector<128x128xf32> -> vector<128x128xf32>
    "tpu.trace_stop"() : () -> ()
    %c0_7 = arith.constant 0 : index
    %c0_8 = arith.constant 0 : index
    %c0_9 = arith.constant 0 : index
    %c0_10 = arith.constant 0 : index
    %14 = vector.load %arg6[%c0_7, %c0_8, %c0_9, %c0_10] : memref<1x4x128x128xf32, #tpu.memory_space<vmem>>, vector<1x1x128x128xf32>
    %15 = vector.shape_cast %14 : vector<1x1x128x128xf32> to vector<128x128xf32>
    %16 = arith.addf %13, %15 : vector<128x128xf32>
    %cst_11 = arith.constant dense<0xFF800000> : vector<128xf32>
    %17 = vector.multi_reduction <maximumf>, %16, %cst_11 [1] : vector<128x128xf32> to vector<128xf32>
    %18 = vector.shape_cast %17 : vector<128xf32> to vector<128x1xf32>
    %19 = vector.broadcast %18 : vector<128x1xf32> to vector<128x128xf32>
    %20 = arith.subf %16, %19 : vector<128x128xf32>
    %21 = math.exp %20 : vector<128x128xf32>
    %cst_12 = arith.constant dense<0.000000e+00> : vector<128xf32>
    %22 = vector.multi_reduction <add>, %21, %cst_12 [1] : vector<128x128xf32> to vector<128xf32>
    %23 = vector.shape_cast %22 : vector<128xf32> to vector<128x1xf32>
    %24 = tpu.reciprocal %23 {approx = true} : vector<128x1xf32> -> vector<128x1xf32>
    %25 = vector.broadcast %24 : vector<128x1xf32> to vector<128x128xf32>
    %26 = arith.mulf %21, %25 : vector<128x128xf32>
    %27 = arith.truncf %26 : vector<128x128xf32> to vector<128x128xbf16>
    %cst_13 = arith.constant dense<0.000000e+00> : vector<128x8xf32>
    %28 = tpu.matmul %27, %12, %cst_13 {dimension_numbers = #tpu.dot_dimension_numbers<[1], [0], [0], [1], [0, 0, 1, 1], [], []>} : vector<128x128xbf16>, vector<128x8xbf16>, vector<128x8xf32> -> vector<128x8xf32>
    %29 = vector.extract_strided_slice %9 {offsets = [0, 8], sizes = [128, 8], strides = [1, 1]} : vector<128x96xbf16> to vector<128x8xbf16>
    %30 = vector.extract_strided_slice %9 {offsets = [0, 40], sizes = [128, 8], strides = [1, 1]} : vector<128x96xbf16> to vector<128x8xbf16>
    %31 = vector.extract_strided_slice %9 {offsets = [0, 72], sizes = [128, 8], strides = [1, 1]} : vector<128x96xbf16> to vector<128x8xbf16>
    "tpu.trace_start"() <{level = 10 : i32, message = "md,nd->mn"}> : () -> ()
    %cst_14 = arith.constant dense<0.000000e+00> : vector<128x128xf32>
    %32 = tpu.matmul %29, %30, %cst_14 {dimension_numbers = #tpu.dot_dimension_numbers<[1], [1], [0], [0], [0, 0, 1, 0], [], []>} : vector<128x8xbf16>, vector<128x8xbf16>, vector<128x128xf32> -> vector<128x128xf32>
    "tpu.trace_stop"() : () -> ()
    %c0_15 = arith.constant 0 : index
    %c1 = arith.constant 1 : index
    %c0_16 = arith.constant 0 : index
    %c0_17 = arith.constant 0 : index
    %33 = vector.load %arg6[%c0_15, %c1, %c0_16, %c0_17] : memref<1x4x128x128xf32, #tpu.memory_space<vmem>>, vector<1x1x128x128xf32>
    %34 = vector.shape_cast %33 : vector<1x1x128x128xf32> to vector<128x128xf32>
    %35 = arith.addf %32, %34 : vector<128x128xf32>
    %cst_18 = arith.constant dense<0xFF800000> : vector<128xf32>
    %36 = vector.multi_reduction <maximumf>, %35, %cst_18 [1] : vector<128x128xf32> to vector<128xf32>
    %37 = vector.shape_cast %36 : vector<128xf32> to vector<128x1xf32>
    %38 = vector.broadcast %37 : vector<128x1xf32> to vector<128x128xf32>
    %39 = arith.subf %35, %38 : vector<128x128xf32>
    %40 = math.exp %39 : vector<128x128xf32>
    %cst_19 = arith.constant dense<0.000000e+00> : vector<128xf32>
    %41 = vector.multi_reduction <add>, %40, %cst_19 [1] : vector<128x128xf32> to vector<128xf32>
    %42 = vector.shape_cast %41 : vector<128xf32> to vector<128x1xf32>
    %43 = tpu.reciprocal %42 {approx = true} : vector<128x1xf32> -> vector<128x1xf32>
    %44 = vector.broadcast %43 : vector<128x1xf32> to vector<128x128xf32>
    %45 = arith.mulf %40, %44 : vector<128x128xf32>
    %46 = arith.truncf %45 : vector<128x128xf32> to vector<128x128xbf16>
    %cst_20 = arith.constant dense<0.000000e+00> : vector<128x8xf32>
    %47 = tpu.matmul %46, %31, %cst_20 {dimension_numbers = #tpu.dot_dimension_numbers<[1], [0], [0], [1], [0, 0, 1, 1], [], []>} : vector<128x128xbf16>, vector<128x8xbf16>, vector<128x8xf32> -> vector<128x8xf32>
    %48 = vector.extract_strided_slice %9 {offsets = [0, 16], sizes = [128, 8], strides = [1, 1]} : vector<128x96xbf16> to vector<128x8xbf16>
    %49 = vector.extract_strided_slice %9 {offsets = [0, 48], sizes = [128, 8], strides = [1, 1]} : vector<128x96xbf16> to vector<128x8xbf16>
    %50 = vector.extract_strided_slice %9 {offsets = [0, 80], sizes = [128, 8], strides = [1, 1]} : vector<128x96xbf16> to vector<128x8xbf16>
    "tpu.trace_start"() <{level = 10 : i32, message = "md,nd->mn"}> : () -> ()
    %cst_21 = arith.constant dense<0.000000e+00> : vector<128x128xf32>
    %51 = tpu.matmul %48, %49, %cst_21 {dimension_numbers = #tpu.dot_dimension_numbers<[1], [1], [0], [0], [0, 0, 1, 0], [], []>} : vector<128x8xbf16>, vector<128x8xbf16>, vector<128x128xf32> -> vector<128x128xf32>
    "tpu.trace_stop"() : () -> ()
    %c0_22 = arith.constant 0 : index
    %c2 = arith.constant 2 : index
    %c0_23 = arith.constant 0 : index
    %c0_24 = arith.constant 0 : index
    %52 = vector.load %arg6[%c0_22, %c2, %c0_23, %c0_24] : memref<1x4x128x128xf32, #tpu.memory_space<vmem>>, vector<1x1x128x128xf32>
    %53 = vector.shape_cast %52 : vector<1x1x128x128xf32> to vector<128x128xf32>
    %54 = arith.addf %51, %53 : vector<128x128xf32>
    %cst_25 = arith.constant dense<0xFF800000> : vector<128xf32>
    %55 = vector.multi_reduction <maximumf>, %54, %cst_25 [1] : vector<128x128xf32> to vector<128xf32>
    %56 = vector.shape_cast %55 : vector<128xf32> to vector<128x1xf32>
    %57 = vector.broadcast %56 : vector<128x1xf32> to vector<128x128xf32>
    %58 = arith.subf %54, %57 : vector<128x128xf32>
    %59 = math.exp %58 : vector<128x128xf32>
    %cst_26 = arith.constant dense<0.000000e+00> : vector<128xf32>
    %60 = vector.multi_reduction <add>, %59, %cst_26 [1] : vector<128x128xf32> to vector<128xf32>
    %61 = vector.shape_cast %60 : vector<128xf32> to vector<128x1xf32>
    %62 = tpu.reciprocal %61 {approx = true} : vector<128x1xf32> -> vector<128x1xf32>
    %63 = vector.broadcast %62 : vector<128x1xf32> to vector<128x128xf32>
    %64 = arith.mulf %59, %63 : vector<128x128xf32>
    %65 = arith.truncf %64 : vector<128x128xf32> to vector<128x128xbf16>
    %cst_27 = arith.constant dense<0.000000e+00> : vector<128x8xf32>
    %66 = tpu.matmul %65, %50, %cst_27 {dimension_numbers = #tpu.dot_dimension_numbers<[1], [0], [0], [1], [0, 0, 1, 1], [], []>} : vector<128x128xbf16>, vector<128x8xbf16>, vector<128x8xf32> -> vector<128x8xf32>
    %67 = vector.extract_strided_slice %9 {offsets = [0, 24], sizes = [128, 8], strides = [1, 1]} : vector<128x96xbf16> to vector<128x8xbf16>
    %68 = vector.extract_strided_slice %9 {offsets = [0, 56], sizes = [128, 8], strides = [1, 1]} : vector<128x96xbf16> to vector<128x8xbf16>
    %69 = vector.extract_strided_slice %9 {offsets = [0, 88], sizes = [128, 8], strides = [1, 1]} : vector<128x96xbf16> to vector<128x8xbf16>
    "tpu.trace_start"() <{level = 10 : i32, message = "md,nd->mn"}> : () -> ()
    %cst_28 = arith.constant dense<0.000000e+00> : vector<128x128xf32>
    %70 = tpu.matmul %67, %68, %cst_28 {dimension_numbers = #tpu.dot_dimension_numbers<[1], [1], [0], [0], [0, 0, 1, 0], [], []>} : vector<128x8xbf16>, vector<128x8xbf16>, vector<128x128xf32> -> vector<128x128xf32>
    "tpu.trace_stop"() : () -> ()
    %c0_29 = arith.constant 0 : index
    %c3 = arith.constant 3 : index
    %c0_30 = arith.constant 0 : index
    %c0_31 = arith.constant 0 : index
    %71 = vector.load %arg6[%c0_29, %c3, %c0_30, %c0_31] : memref<1x4x128x128xf32, #tpu.memory_space<vmem>>, vector<1x1x128x128xf32>
    %72 = vector.shape_cast %71 : vector<1x1x128x128xf32> to vector<128x128xf32>
    %73 = arith.addf %70, %72 : vector<128x128xf32>
    %cst_32 = arith.constant dense<0xFF800000> : vector<128xf32>
    %74 = vector.multi_reduction <maximumf>, %73, %cst_32 [1] : vector<128x128xf32> to vector<128xf32>
    %75 = vector.shape_cast %74 : vector<128xf32> to vector<128x1xf32>
    %76 = vector.broadcast %75 : vector<128x1xf32> to vector<128x128xf32>
    %77 = arith.subf %73, %76 : vector<128x128xf32>
    %78 = math.exp %77 : vector<128x128xf32>
    %cst_33 = arith.constant dense<0.000000e+00> : vector<128xf32>
    %79 = vector.multi_reduction <add>, %78, %cst_33 [1] : vector<128x128xf32> to vector<128xf32>
    %80 = vector.shape_cast %79 : vector<128xf32> to vector<128x1xf32>
    %81 = tpu.reciprocal %80 {approx = true} : vector<128x1xf32> -> vector<128x1xf32>
    %82 = vector.broadcast %81 : vector<128x1xf32> to vector<128x128xf32>
    %83 = arith.mulf %78, %82 : vector<128x128xf32>
    %84 = arith.truncf %83 : vector<128x128xf32> to vector<128x128xbf16>
    %cst_34 = arith.constant dense<0.000000e+00> : vector<128x8xf32>
    %85 = tpu.matmul %84, %69, %cst_34 {dimension_numbers = #tpu.dot_dimension_numbers<[1], [0], [0], [1], [0, 0, 1, 1], [], []>} : vector<128x128xbf16>, vector<128x8xbf16>, vector<128x8xf32> -> vector<128x8xf32>
    %86 = tpu.concatenate %28, %47, %66, %85 in 1 : vector<128x8xf32>, vector<128x8xf32>, vector<128x8xf32>, vector<128x8xf32> -> vector<128x32xf32>
    %87 = arith.truncf %86 : vector<128x32xf32> to vector<128x32xbf16>
    %c0_35 = arith.constant 0 : index
    %c0_36 = arith.constant 0 : index
    %88 = vector.load %arg4[%c0_35, %c0_36] : memref<32x32xbf16, #tpu.memory_space<vmem>>, vector<32x32xbf16>
    %cst_37 = arith.constant dense<0.000000e+00> : vector<128x32xf32>
    %89 = tpu.matmul %87, %88, %cst_37 {dimension_numbers = #tpu.dot_dimension_numbers<[1], [0], [0], [1], [0, 0, 1, 1], [], []>} : vector<128x32xbf16>, vector<32x32xbf16>, vector<128x32xf32> -> vector<128x32xf32>
    %c0_38 = arith.constant 0 : index
    %c0_39 = arith.constant 0 : index
    %90 = vector.load %arg5[%c0_38, %c0_39] : memref<1x32xf32, #tpu.memory_space<vmem>>, vector<1x32xf32>
    %91 = vector.shape_cast %90 : vector<1x32xf32> to vector<32xf32>
    %92 = vector.shape_cast %91 : vector<32xf32> to vector<1x32xf32>
    %93 = vector.broadcast %92 : vector<1x32xf32> to vector<128x32xf32>
    %94 = arith.addf %89, %93 : vector<128x32xf32>
    %c0_40 = arith.constant 0 : index
    %c0_41 = arith.constant 0 : index
    %c0_42 = arith.constant 0 : index
    %95 = vector.load %arg7[%c0_40, %c0_41, %c0_42] : memref<1x128x32xf32, #tpu.memory_space<vmem>>, vector<1x128x32xf32>
    %96 = vector.shape_cast %95 : vector<1x128x32xf32> to vector<128x32xf32>
    %97 = vector.shape_cast %94 : vector<128x32xf32> to vector<1x128x32xf32>
    tpu.vector_store %arg7[%c0_40, %c0_41, %c0_42], %97 {strides = array<i32>} : memref<1x128x32xf32, #tpu.memory_space<vmem>>, vector<1x128x32xf32>,
    return
  }
  func.func @transform_0(%arg0: i32) -> (i32, i32, i32) {
    %c0_i32 = arith.constant 0 : i32
    %c0_i32_0 = arith.constant 0 : i32
    %c0_i32_1 = arith.constant 0 : i32
    return %arg0, %c0_i32, %c0_i32_0 : i32, i32, i32
  }
  func.func @transform_1(%arg0: i32) -> (i32, i32) {
    %c0_i32 = arith.constant 0 : i32
    %c0_i32_0 = arith.constant 0 : i32
    %c0_i32_1 = arith.constant 0 : i32
    return %c0_i32, %c0_i32_0 : i32, i32
  }
  func.func @transform_2(%arg0: i32) -> (i32, i32) {
    %c0_i32 = arith.constant 0 : i32
    %c0_i32_0 = arith.constant 0 : i32
    %c0_i32_1 = arith.constant 0 : i32
    return %c0_i32, %c0_i32_0 : i32, i32
  }
  func.func @transform_3(%arg0: i32) -> (i32, i32) {
    %c0_i32 = arith.constant 0 : i32
    %c0_i32_0 = arith.constant 0 : i32
    %c0_i32_1 = arith.constant 0 : i32
    return %c0_i32, %c0_i32_0 : i32, i32
  }
  func.func @transform_4(%arg0: i32) -> (i32, i32) {
    %c0_i32 = arith.constant 0 : i32
    %c0_i32_0 = arith.constant 0 : i32
    %c0_i32_1 = arith.constant 0 : i32
    return %c0_i32, %c0_i32_0 : i32, i32
  }
  func.func @transform_5(%arg0: i32) -> (i32, i32, i32, i32) {
    %c0_i32 = arith.constant 0 : i32
    %c0_i32_0 = arith.constant 0 : i32
    %c0_i32_1 = arith.constant 0 : i32
    %c0_i32_2 = arith.constant 0 : i32
    %c0_i32_3 = arith.constant 0 : i32
    return %c0_i32, %c0_i32_0, %c0_i32_1, %c0_i32_2 : i32, i32, i32, i32
  }
  func.func @transform_6(%arg0: i32) -> (i32, i32, i32) {
    %c0_i32 = arith.constant 0 : i32
    %c0_i32_0 = arith.constant 0 : i32
    %c0_i32_1 = arith.constant 0 : i32
    return %arg0, %c0_i32, %c0_i32_0 : i32, i32, i32
  }
}

</mosaic_0001>

<bundles_post_ra>
// kernel: tpu_custom_call.1
= control target key start
LH: loop header
LB: loop body
LE: loop exit
PB: predicated region body
PF: predicated region fallthrough
CT: control target
= control target key end

     0   :  { %11 = vsyncpa [#allocation3], 0  ;;  %s3018_s21 = smov 0   ;;  %s4378_s0 = inlined_call_operand.vmem [shape: bf16[2,128,32], index: 0, kind: input, shape index: {}]   ;;  %s4379_s1 = inlined_call_operand.vmem [shape: bf16[32,96], index: 1, kind: input, shape index: {}]   ;;  %s4380_s2 = inlined_call_operand.vmem [shape: f32[1,96], index: 2, kind: input, shape index: {}]   ;;  %s4381_s3 = inlined_call_operand.vmem [shape: bf16[32,32], index: 3, kind: input, shape index: {}]   ;;  %s4382_s4 = inlined_call_operand.vmem [shape: f32[1,32], index: 4, kind: input, shape index: {}]   ;;  %s4383_s5 = inlined_call_operand.hbm [shape: f32[1,4,128,128], index: 5, kind: input, shape index: {}]   ;;  %s4384_s6 = inlined_call_operand.vmem [shape: f32[2,128,32], index: 6, kind: output, shape index: {}]  }
   0x1 LB: > { %s202_s24 = sshll.u32 %s4383_s5, 4  ;;  %s2370_s25 = sadd.s32 4294967295, %s2964_s21   ;;  %s2964_s21 = sphi %s3018_s21, %s17_s21   ;;  %s203_s24 = int_to_ptr.hbm [resolvable:$true] %s202_s24 }
   0x2   : > { %p2372_p0 = scmp.ge.s32.totalorder %s2964_s21, 1  ;;  %p179_p1 = scmp.lt.s32.totalorder %s2964_s21, 3 }
   0x3   : > { %p2519_p2 = scmp.eq.s32.totalorder %s2370_s25, 0  ;;  %s2966_s26 = smov [#allocation2]  }
   0x4   : > { %p180_p3 = pnand %p2372_p0, %p179_p1  ;;  %s204_s27 = sshll.u32 %s2966_s26, 4  ;;  %s205_s27 = int_to_ptr.vmem [resolvable:$true] %s204_s27 }
   0x5   : > { %s2967_s28 = smov 128   ;;  %s2968_s29 = smov 8  }
   0x6   : > { %p2515_p4 = pneg %p180_p3  ;;  %228 = sbr.rel (%p180_p3) target bundleno = 2043 (0x7fb), region = 44 }
   0x8   : > { %p2516_p5 = pnand %p2519_p2, %p2515_p4 }
   0xa   : > { %2518 = dma.hbm_to_vmem [thread:$0]  (!%p2516_p5), %s203_s24, 8192, %s205_s27, [#allocation3], %s2967_s28, %s2967_s28, %s2968_s29  }
   0xb   : > { %2959 = dma.done.wait (%p2519_p2), [#allocation3], 8192  }
   0xc   : > { %2961 = vsyncadd (%p2519_p2), [#allocation3], 4294959104  ;;  %p259_p6 = scmp.lt.s32.totalorder %s2370_s25, 1  ;;  %v2490_v0 = vld [vmem:[%s4379_s1 + $0x8] sm:$0xff]  ;;  %v2489_v1 = vld [vmem:[%s4379_s1] sm:$0xff]  ;;  %vm346_vm0 = vcmask 261120  }
   0xd   : > { %2493 = vmatpush.bf16.msra.mxu3 %v2490_v0  ;;  %377 = vmatpush.bf16.msra.mxu0 %v2490_v0  ;;  %v3052_v14 = vld [vmem:[%s4380_s2] ss:$0 sm:$0xff]  ;;  %s2969_s16 = smov 96   ;;  %s2970_s17 = smov 88   ;;  %vm508_vm1 = vcmask 64512   ;;  %vm2152_vm2 = vcmask 130048  }
   0xe   : > { %s4411_s25 = smov (!%p259_p6, %s2370_s25), 1  ;;  %s2971_s18 = smov 120   ;;  %vm2169_vm3 = vcmask 195584  }
   0xf   : > { %s2479_s30 = sshll.u32 %s4411_s25, 6  ;;  %s2972_s19 = smov 64  }
  0x10   : > { %s263_s13 = scalar_lea.vmem %s4378_s0, %s2479_s30  ;;  %s2973_s20 = smov 80  }
  0x11   : > { %v2483_v2 = vld [vmem:[%s263_s13 + $0x10] sm:$0xff]  ;;  %v2481_v3 = vld [vmem:[%s263_s13] sm:$0xff]  ;;  %2494 = vmatpush.bf16.msra.mxu3 %v2489_v1  ;;  %378 = vmatpush.bf16.msra.mxu0 %v2489_v1  ;;  %v2484_v4 = vld [vmem:[%s263_s13 + $0x18] sm:$0xff]  ;;  %s2974_s22 = smov 72   ;;  %s2975_s23 = smov 112  }
  0x12   : > { %v2482_v5 = vld [vmem:[%s263_s13 + $0x8] sm:$0xff]  ;;  %v2485_v6 = vld [vmem:[%s263_s13 + $0x20] sm:$0xff]  ;;  %v2487_v8 = vld [vmem:[%s263_s13 + $0x30] sm:$0xff]  ;;  %s2976_s24 = smov 104   ;;  %s2977_s26 = smov 56  }
  0x13   : > { %v2486_v7 = vld [vmem:[%s263_s13 + $0x28] sm:$0xff]  ;;  %v2488_v9 = vld [vmem:[%s263_s13 + $0x38] sm:$0xff]  ;;  %s2978_s27 = smov 40   ;;  %s2979_s28 = smov 48  }
  0x14   : > { %2423 = vmatmul.msk.bf16.vlgmr.msra.gmra.mxu3 %vm346_vm0, %v2483_v2  ;;  %2421 = vmatmul.msk.bf16.vlgmr.msra.gmra.mxu0 %vm346_vm0, %v2481_v3  ;;  %s2980_s29 = smov 24   ;;  %s2981_s30 = smov 8  }
  0x15   : > { %s2982_s7 = smov 16   ;;  %s2480_s12 = sshll.u32 %s4411_s25, 7 }
  0x24   : > { %2424 = vmatmul.msk.bf16.gmra.mxu3 %vm346_vm0, %v2484_v4  ;;  %2422 = vmatmul.msk.bf16.gmra.mxu0 %vm346_vm0, %v2482_v5 }
  0x34   : > { %2425 = vmatmul.msk.bf16.gmra.mxu3 %vm346_vm0, %v2485_v6 }
  0x44   : > { %2426 = vmatmul.msk.bf16.gmra.mxu3 %vm346_vm0, %v2486_v7 }
  0x54   : > { %2427 = vmatmul.msk.bf16.gmra.mxu3 %vm346_vm0, %v2487_v8 }
  0x64   : > { %2428 = vmatmul.msk.bf16.gmra.mxu3 %vm346_vm0, %v2488_v9 }
  0x91   : > { %v380_v12 = vpop.f32.mrf.mxu0 }
  0x92   : > { %v381_v59 = vadd.f32 %v3052_v14, %v380_v12 }
  0x94   : > { %v420_v61 = vpack.c.bf16 %v381_v59, %v381_v59 }
  0x96   : > { %v468_v0 = vunpack.c.l.b16 %v420_v61 }
  0x97   : > { %v390_v10 = vpop.f32.mrf.mxu3 }
  0x98   : > { %v391_v22 = vadd.f32 %v3052_v14, %v390_v10 }
  0x99   : > { %v382_v15 = vpop.f32.mrf.mxu0 }
  0x9a   : > { %v424_v29 = vpack.c.bf16 %v391_v22, %v391_v22  ;;  %v383_v60 = vadd.f32 %v3052_v14, %v382_v15 }
  0x9c   : > { %v472_v31 = vunpack.c.l.b16 %v424_v29  ;;  %v421_v62 = vpack.c.bf16 %v383_v60, %v383_v60 }
  0x9e   : > { %v469_v1 = vunpack.c.l.b16 %v421_v62 }
  0x9f   : > { %v392_v11 = vpop.f32.mrf.mxu3 }
  0xa0   : > { %v393_v20 = vadd.f32 %v3052_v14, %v392_v11  ;;  %v3092_v2 = vpack.c.b16 %v469_v1, %v468_v0 }
  0xa1   : > { %v385_v25 = vpop.f32.mrf.mxu0 }
  0xa2   : > { %v425_v26 = vpack.c.bf16 %v393_v20, %v393_v20  ;;  %v386_v38 = vadd.f32 %v3052_v14, %v385_v25 }
  0xa4   : > { %v473_v30 = vunpack.c.l.b16 %v425_v26  ;;  %v422_v43 = vpack.c.bf16 %v386_v38, %v386_v38 }
  0xa6   : > { %v3063_v33 = vpack.c.b16 %v473_v30, %v472_v31  ;;  %v470_v47 = vunpack.c.l.b16 %v422_v43 }
  0xa7   : > { %v395_v13 = vpop.f32.mrf.mxu3 }
  0xa8   : > { %v396_v16 = vadd.f32 %v3052_v14, %v395_v13 }
  0xa9   : > { %v387_v34 = vpop.f32.mrf.mxu0 }
  0xaa   : > { %v426_v18 = vpack.c.bf16 %v396_v16, %v396_v16  ;;  %v388_v39 = vadd.f32 %v3052_v14, %v387_v34 }
  0xac   : > { %v474_v23 = vunpack.c.l.b16 %v426_v18  ;;  %v423_v44 = vpack.c.bf16 %v388_v39, %v388_v39 }
  0xae   : > { %v471_v48 = vunpack.c.l.b16 %v423_v44 }
  0xaf   : > { %v397_v17 = vpop.f32.mrf.mxu3 }
  0xb0   : > { %v398_v19 = vadd.f32 %v3052_v14, %v397_v17  ;;  %v3075_v50 = vpack.c.b16 %v471_v48, %v470_v47 }
  0xb2   : > { %v427_v21 = vpack.c.bf16 %v398_v19, %v398_v19 }
  0xb4   : > { %v475_v24 = vunpack.c.l.b16 %v427_v21 }
  0xb6   : > { %v3058_v27 = vpack.c.b16 %v475_v24, %v474_v23 }
  0xb7   : > { %v400_v28 = vpop.f32.mrf.mxu3 }
  0xb8   : > { %498 = vrot.lane.b32.xlu2 %v3058_v27, %s2969_s16  ;;  %v401_v32 = vadd.f32 %v3052_v14, %v400_v28 }
  0xba   : > { %v428_v36 = vpack.c.bf16 %v401_v32, %v401_v32 }
  0xbc   : > { %v476_v41 = vunpack.c.l.b16 %v428_v36 }
  0xbf   : > { %v402_v35 = vpop.f32.mrf.mxu3 }
  0xc0   : > { %v403_v37 = vadd.f32 %v3052_v14, %v402_v35  ;;  %496 = vrot.lane.b32.xlu2 %v3063_v33, %s2969_s16 }
  0xc2   : > { %v429_v40 = vpack.c.bf16 %v403_v37, %v403_v37 }
  0xc4   : > { %v477_v42 = vunpack.c.l.b16 %v429_v40 }
  0xc6   : > { %v3070_v45 = vpack.c.b16 %v477_v42, %v476_v41 }
  0xc7   : > { %v405_v46 = vpop.f32.mrf.mxu3 }
  0xc8   : > { %872 = vrot.lane.b32.xlu2 %v3070_v45, %s2970_s17  ;;  %v406_v49 = vadd.f32 %v3052_v14, %v405_v46 }
  0xca   : > { %v430_v51 = vpack.c.bf16 %v406_v49, %v406_v49 }
  0xcc   : > { %v478_v54 = vunpack.c.l.b16 %v430_v51 }
  0xcf   : > { %v407_v52 = vpop.f32.mrf.mxu3 }
  0xd0   : > { %v408_v53 = vadd.f32 %v3052_v14, %v407_v52  ;;  %866 = vrot.lane.b32.xlu2 %v3075_v50, %s2970_s17 }
  0xd2   : > { %v431_v55 = vpack.c.bf16 %v408_v53, %v408_v53 }
  0xd4   : > { %v479_v56 = vunpack.c.l.b16 %v431_v55 }
  0xd6   : > { %v3080_v57 = vpack.c.b16 %v479_v56, %v478_v54 }
  0xd7   : > { %v410_v58 = vpop.f32.mrf.mxu3 }
  0xd8   : > { %502 = vrot.lane.b32.xlu1 %v3080_v57, %s2969_s16  ;;  %852 = vrot.lane.b32.xlu2 %v3063_v33, %s2971_s18  ;;  %v411_v4 = vadd.f32 %v3052_v14, %v410_v58 }
  0xda   : > { %v432_v7 = vpack.c.bf16 %v411_v4, %v411_v4 }
  0xdc   : > { %v480_v12 = vunpack.c.l.b16 %v432_v7 }
  0xdf   : > { %v412_v63 = vpop.f32.mrf.mxu3 }
  0xe0   : > { %500 = vrot.lane.b32.xlu1 %v3070_v45, %s2969_s16  ;;  %764 = vrot.lane.b32.xlu2 %v3058_v27, %s2972_s19  ;;  %v413_v5 = vadd.f32 %v3052_v14, %v412_v63 }
  0xe2   : > { %v433_v8 = vpack.c.bf16 %v413_v5, %v413_v5 }
  0xe4   : > { %v481_v13 = vunpack.c.l.b16 %v433_v8 }
  0xe6   : > { %v3106_v18 = vpack.c.b16 %v481_v13, %v480_v12 }
  0xe7   : > { %v415_v3 = vpop.f32.mrf.mxu3 }
  0xe8   : > { %854 = vrot.lane.b32.xlu2 %v3058_v27, %s2971_s18  ;;  %492 = vrot.lane.b32.xlu1 %v3092_v2, %s2969_s16  ;;  %v416_v6 = vadd.f32 %v3052_v14, %v415_v3 }
  0xea   : > { %v434_v9 = vpack.c.bf16 %v416_v6, %v416_v6 }
  0xec   : > { %v482_v15 = vunpack.c.l.b16 %v434_v9 }
  0xef   : > { %v417_v10 = vpop.f32.mrf.mxu3 }
  0xf0   : > { %v418_v11 = vadd.f32 %v3052_v14, %v417_v10  ;;  %758 = vrot.lane.b32.xlu2 %v3092_v2, %s2972_s19  ;;  %874 = vrot.lane.b32.xlu1 %v3080_v57, %s2970_s17 }
  0xf2   : > { %v435_v16 = vpack.c.bf16 %v418_v11, %v418_v11 }
  0xf4   : > { %v483_v17 = vunpack.c.l.b16 %v435_v16 }
  0xf6   : > { %v3108_v19 = vpack.c.b16 %v483_v17, %v482_v15 }
  0xf8   : > { %506 = vrot.lane.b32.xlu0 %v3108_v19, %s2969_s16  ;;  %1247 = vrot.lane.b32.xlu2 %v3106_v18, %s2973_s20 }
  0xf9   : > { %868 = vrot.lane.b32.xlu1 %v3063_v33, %s2970_s17 }
 0x100   : > { %504 = vrot.lane.b32.xlu0 %v3106_v18, %s2969_s16  ;;  %1618 = vrot.lane.b32.xlu2 %v3106_v18, %s2974_s22 }
 0x101   : > { %850 = vrot.lane.b32.xlu1 %v3075_v50, %s2971_s18 }
 0x108   : > { %494 = vrot.lane.b32.xlu0 %v3075_v50, %s2969_s16  ;;  %1245 = vrot.lane.b32.xlu2 %v3080_v57, %s2973_s20 }
 0x109   : > { %770 = vrot.lane.b32.xlu1 %v3106_v18, %s2972_s19 }
 0x110   : > { %876 = vrot.lane.b32.xlu0 %v3106_v18, %s2970_s17  ;;  %858 = vrot.lane.b32.xlu2 %v3080_v57, %s2971_s18 }
 0x111   : > { %768 = vrot.lane.b32.xlu1 %v3080_v57, %s2972_s19 }
 0x112   : > { %v3134_v14 = vpop.permute.xlu2 %498 }
 0x113   : > { %v543_v58 = vsel %vm508_vm1, %v3134_v14, 0 }
 0x118   : > { %870 = vrot.lane.b32.xlu0 %v3058_v27, %s2970_s17  ;;  %1616 = vrot.lane.b32.xlu2 %v3080_v57, %s2974_s22 }
 0x119   : > { %760 = vrot.lane.b32.xlu1 %v3075_v50, %s2972_s19 }
 0x11a   : > { %v3142_v20 = vpop.permute.xlu2 %496 }
 0x11b   : > { %v540_v62 = vsel %vm508_vm1, %v3142_v20, 0 }
 0x120   : > { %1243 = vrot.lane.b32.xlu2 %v3070_v45, %s2973_s20  ;;  %864 = vrot.lane.b32.xlu0 %v3092_v2, %s2970_s17 }
 0x121   : > { %1241 = vrot.lane.b32.xlu1 %v3058_v27, %s2973_s20 }
 0x122   : > { %v3150_v21 = vpop.permute.xlu2 %872 }
 0x128   : > { %860 = vrot.lane.b32.xlu2 %v3106_v18, %s2971_s18  ;;  %848 = vrot.lane.b32.xlu0 %v3092_v2, %s2971_s18 }
 0x129   : > { %1239 = vrot.lane.b32.xlu1 %v3063_v33, %s2973_s20 }
 0x12a   : > { %v3158_v22 = vpop.permute.xlu2 %866 }
 0x130   : > { %1612 = vrot.lane.b32.xlu2 %v3058_v27, %s2974_s22  ;;  %766 = vrot.lane.b32.xlu0 %v3070_v45, %s2972_s19 }
 0x131   : > { %1610 = vrot.lane.b32.xlu1 %v3063_v33, %s2974_s22 }
 0x132   : > { %v3166_v23 = vpop.permute.xlu2 %852 }
 0x138   : > { %1235 = vrot.lane.b32.xlu2 %v3092_v2, %s2973_s20  ;;  %762 = vrot.lane.b32.xlu0 %v3063_v33, %s2972_s19 }
 0x139   : > { %1237 = vrot.lane.b32.xlu1 %v3075_v50, %s2973_s20 }
 0x13a   : > { %v3174_v24 = vpop.permute.xlu2 %764 }
 0x140   : > { %1221 = vrot.lane.b32.xlu2 %v3075_v50, %s2975_s23  ;;  %856 = vrot.lane.b32.xlu0 %v3070_v45, %s2971_s18 }
 0x141   : > { %1608 = vrot.lane.b32.xlu1 %v3075_v50, %s2974_s22 }
 0x142   : > { %v3182_v25 = vpop.permute.xlu2 %854 }
 0x148   : > { %1592 = vrot.lane.b32.xlu2 %v3075_v50, %s2976_s24  ;;  %1614 = vrot.lane.b32.xlu0 %v3070_v45, %s2974_s22 }
 0x149   : > { %1219 = vrot.lane.b32.xlu1 %v3092_v2, %s2975_s23 }
 0x14a   : > { %v503_v26 = vpop.permute.xlu1 %502  ;;  %v3190_v28 = vpop.permute.xlu2 %758 }
 0x14b   : > { %v549_v48 = vsel %vm508_vm1, %v503_v26, 0 }
 0x150   : > { %1225 = vrot.lane.b32.xlu2 %v3058_v27, %s2975_s23  ;;  %1606 = vrot.lane.b32.xlu0 %v3092_v2, %s2974_s22 }
 0x151   : > { %1590 = vrot.lane.b32.xlu1 %v3092_v2, %s2976_s24 }
 0x152   : > { %v501_v29 = vpop.permute.xlu1 %500  ;;  %v3198_v30 = vpop.permute.xlu2 %1247 }
 0x153   : > { %v546_v53 = vsel %vm508_vm1, %v501_v29, 0 }
 0x158   : > { %878 = vrot.lane.b32.xlu2 %v3108_v19, %s2970_s17  ;;  %1594 = vrot.lane.b32.xlu0 %v3063_v33, %s2976_s24  ;;  %s4298_s17 = scalar_lea.vmem %s4384_s6, %s2480_s12 }
 0x159   : > { %1223 = vrot.lane.b32.xlu1 %v3063_v33, %s2975_s23 }
 0x15a   : > { %v3206_v31 = vpop.permute.xlu2 %1618  ;;  %v3208_v32 = vpop.permute.xlu1 %492 }
 0x15b   : > { %v534_v7 = vsel %vm508_vm1, %v3208_v32, 0 }
 0x160   : > { %1600 = vrot.lane.b32.xlu2 %v3080_v57, %s2976_s24  ;;  %1596 = vrot.lane.b32.xlu0 %v3058_v27, %s2976_s24 }
 0x161   : > { %1598 = vrot.lane.b32.xlu1 %v3070_v45, %s2976_s24 }
 0x162   : > { %v3216_v34 = vpop.permute.xlu2 %1245  ;;  %v3218_v35 = vpop.permute.xlu1 %874 }
 0x163   : > { %v920_v29 = vsel %vm508_vm1, %v3218_v35, 0 }
 0x168   : > { %1139 = vrot.lane.b32.xlu2 %v3080_v57, %s2977_s26  ;;  %1227 = vrot.lane.b32.xlu0 %v3070_v45, %s2975_s23 }
 0x169   : > { %1229 = vrot.lane.b32.xlu1 %v3080_v57, %s2975_s23 }
 0x16a   : > { %v507_v36 = vpop.permute.xlu0 %506  ;;  %v3226_v37 = vpop.permute.xlu2 %858 }
 0x16b   : > { %v3228_v38 = vpop.permute.xlu1 %868  ;;  %v555_v39 = vsel %vm508_vm1, %v507_v36, 0 }
 0x16c   : > { %557 = vmatpush.bf16.xpose.msra.mxu1 %v555_v39  ;;  %v917_v39 = vsel %vm508_vm1, %v3150_v21, 0 }
 0x170   : > { %1131 = vrot.lane.b32.xlu2 %v3075_v50, %s2977_s26  ;;  %772 = vrot.lane.b32.xlu0 %v3108_v19, %s2972_s19 }
 0x171   : > { %1620 = vrot.lane.b32.xlu1 %v3108_v19, %s2974_s22 }
 0x172   : > { %v505_v40 = vpop.permute.xlu0 %504  ;;  %v3237_v41 = vpop.permute.xlu2 %1616 }
 0x173   : > { %v3239_v42 = vpop.permute.xlu1 %850  ;;  %v552_v43 = vsel %vm508_vm1, %v505_v40, 0 }
 0x174   : > { %558 = vmatpush.bf16.xpose.msra.mxu1 %v552_v43 }
 0x178   : > { %1249 = vrot.lane.b32.xlu0 %v3108_v19, %s2973_s20 }
 0x179   : > { %862 = vrot.lane.b32.xlu1 %v3108_v19, %s2971_s18 }
 0x17a   : > { %v495_v44 = vpop.permute.xlu0 %494  ;;  %v3246_v46 = vpop.permute.xlu2 %1243 }
 0x17b   : > { %v3248_v47 = vpop.permute.xlu1 %770  ;;  %v537_v3 = vsel %vm508_vm1, %v495_v44, 0 }
 0x17c   : > { %559 = vmatpush.bf16.xpose.msra.mxu1 %v549_v48 }
 0x180   : > { %1137 = vrot.lane.b32.xlu0 %v3070_v45, %s2977_s26 }
 0x181   : > { %1141 = vrot.lane.b32.xlu1 %v3106_v18, %s2977_s26 }
 0x182   : > { %v877_v49 = vpop.permute.xlu0 %876  ;;  %v3255_v51 = vpop.permute.xlu2 %860 }
 0x183   : > { %v3257_v52 = vpop.permute.xlu1 %768  ;;  %v923_v14 = vsel %vm508_vm1, %v877_v49, 0  ;;  %v911_v49 = vsel %vm508_vm1, %v3228_v38, 0 }
 0x184   : > { %560 = vmatpush.bf16.xpose.msra.mxu1 %v546_v53 }
 0x188   : > { %1143 = vrot.lane.b32.xlu0 %v3108_v19, %s2977_s26 }
 0x189   : > { %1231 = vrot.lane.b32.xlu1 %v3106_v18, %s2975_s23 }
 0x18a   : > { %v871_v54 = vpop.permute.xlu0 %870  ;;  %v3264_v55 = vpop.permute.xlu2 %1612 }
 0x18b   : > { %v3266_v56 = vpop.permute.xlu1 %760  ;;  %v914_v44 = vsel %vm508_vm1, %v871_v54, 0 }
 0x18c   : > { %561 = vmatpush.bf16.xpose.msra.mxu1 %v543_v58  ;;  %v908_v58 = vsel %vm508_vm1, %v3158_v22, 0 }
 0x190   : > { %1135 = vrot.lane.b32.xlu0 %v3058_v27, %s2977_s26 }
 0x191   : > { %1602 = vrot.lane.b32.xlu1 %v3106_v18, %s2976_s24 }
 0x192   : > { %v3274_v59 = vpop.permute.xlu2 %1235  ;;  %v3276_v60 = vpop.permute.xlu0 %864 }
 0x193   : > { %v3278_v61 = vpop.permute.xlu1 %1241  ;;  %v905_v22 = vsel %vm508_vm1, %v3276_v60, 0 }
 0x194   : > { %562 = vmatpush.bf16.xpose.msra.mxu1 %v540_v62 }
 0x198   : > { %1233 = vrot.lane.b32.xlu0 %v3108_v19, %s2975_s23 }
 0x199   : > { %1133 = vrot.lane.b32.xlu1 %v3063_v33, %s2977_s26 }
 0x19a   : > { %v3286_v63 = vpop.permute.xlu2 %1221  ;;  %v3288_v0 = vpop.permute.xlu0 %848 }
 0x19b   : > { %v3290_v1 = vpop.permute.xlu1 %1239 }
 0x19c   : > { %563 = vmatpush.bf16.xpose.msra.mxu1 %v537_v3 }
 0x1a1   : > { %1604 = vrot.lane.b32.xlu1 %v3108_v19, %s2976_s24 }
 0x1a2   : > { %v3295_v4 = vpop.permute.xlu2 %1592  ;;  %v767_v5 = vpop.permute.xlu0 %766 }
 0x1a3   : > { %v3297_v6 = vpop.permute.xlu1 %1610 }
 0x1a4   : > { %564 = vmatpush.bf16.xpose.msra.mxu1 %v534_v7  ;;  %v1294_v7 = vsel %vm508_vm1, %v3198_v30, 0  ;;  %v1653_v30 = vsel %vm508_vm1, %v3297_v6, 0 }
 0x1aa   : > { %v3301_v8 = vpop.permute.xlu2 %1225  ;;  %v3303_v9 = vpop.permute.xlu0 %762 }
 0x1ab   : > { %v3305_v10 = vpop.permute.xlu1 %1237  ;;  %2429 = vmatmul.msk.bf16.vlgmr.msra.gmra.mxu1 %vm508_vm1, %v3092_v2 }
 0x1b2   : > { %v879_v11 = vpop.permute.xlu2 %878  ;;  %v3309_v12 = vpop.permute.xlu0 %856 }
 0x1b3   : > { %v3311_v13 = vpop.permute.xlu1 %1608  ;;  %v926_v15 = vsel %vm508_vm1, %v879_v11, 0  ;;  %v1291_v11 = vsel %vm508_vm1, %v3216_v34, 0 }
 0x1b4   : > { %928 = vmatpush.bf16.xpose.msrb.mxu3 %v926_v15  ;;  %v1650_v34 = vsel %vm508_vm1, %v3311_v13, 0  ;;  %v437_v13 = vld [vmem:[#allocation2 + $0x8] sm:$0xff] }
 0x1ba   : > { %v3314_v16 = vpop.permute.xlu0 %1614 }
 0x1bb   : > { %v3316_v17 = vpop.permute.xlu1 %1219  ;;  %2430 = vmatmul.msk.bf16.gmra.mxu1 %vm508_vm1, %v3075_v50 }
 0x1bc   : > { %929 = vmatpush.bf16.xpose.msrb.mxu3 %v923_v14 }
 0x1c2   : > { %v3321_v20 = vpop.permute.xlu0 %1606 }
 0x1c3   : > { %v3323_v26 = vpop.permute.xlu1 %1590  ;;  %v1647_v6 = vsel %vm508_vm1, %v3321_v20, 0 }
 0x1c4   : > { %930 = vmatpush.bf16.xpose.msrb.mxu3 %v920_v29  ;;  %v1282_v29 = vsel %vm508_vm1, %v3290_v1, 0  ;;  %v1276_v1 = vsel %vm508_vm1, %v3274_v59, 0 }
 0x1ca   : > { %v3327_v32 = vpop.permute.xlu0 %1594 }
 0x1cb   : > { %v3329_v36 = vpop.permute.xlu1 %1223  ;;  %2431 = vmatmul.msk.bf16.gmra.mxu1 %vm508_vm1, %v3063_v33 }
 0x1cc   : > { %931 = vmatpush.bf16.xpose.msrb.mxu3 %v917_v39 }
 0x1d2   : > { %v3335_v40 = vpop.permute.xlu0 %1596 }
 0x1d3   : > { %v3337_v43 = vpop.permute.xlu1 %1598 }
 0x1d4   : > { %932 = vmatpush.bf16.xpose.msrb.mxu3 %v914_v44  ;;  %v1279_v44 = vsel %vm508_vm1, %v3305_v10, 0 }
 0x1da   : > { %v3340_v35 = vpop.permute.xlu0 %1227 }
 0x1db   : > { %v3342_v48 = vpop.permute.xlu1 %1229  ;;  %2432 = vmatmul.msk.bf16.gmra.mxu1 %vm508_vm1, %v3058_v27 }
 0x1dc   : > { %933 = vmatpush.bf16.xpose.msrb.mxu3 %v911_v49 }
 0x1e2   : > { %v773_v21 = vpop.permute.xlu0 %772 }
 0x1e3   : > { %v1621_v53 = vpop.permute.xlu1 %1620  ;;  %782 = vmatpush.bf16.msrb.mxu0 %v773_v21  ;;  %2495 = vmatpush.bf16.msrb.mxu1 %v773_v21 }
 0x1e4   : > { %2496 = vmatpush.bf16.msra.mxu2 %v773_v21  ;;  %934 = vmatpush.bf16.xpose.msrb.mxu3 %v908_v58  ;;  %v1668_v62 = vsel %vm508_vm1, %v1621_v53, 0 }
 0x1e7   : > { %783 = vmatpush.bf16.msrb.mxu0 %v3248_v47  ;;  %2497 = vmatpush.bf16.msrb.mxu1 %v3248_v47 }
 0x1e8   : > { %2498 = vmatpush.bf16.msra.mxu2 %v3248_v47  ;;  %v1665_v47 = vsel %vm508_vm1, %v3206_v31, 0  ;;  %v3380_v31 = vpop.permute.xlu2 %1600 }
 0x1ea   : > { %v1250_v38 = vpop.permute.xlu0 %1249 }
 0x1eb   : > { %2433 = vmatmul.msk.bf16.gmra.mxu1 %vm508_vm1, %v3070_v45  ;;  %784 = vmatpush.bf16.msrb.mxu0 %v3257_v52  ;;  %v3356_v54 = vpop.permute.xlu1 %862 }
 0x1ec   : > { %2499 = vmatpush.bf16.msrb.mxu1 %v3257_v52  ;;  %2500 = vmatpush.bf16.msra.mxu2 %v3257_v52 }
 0x1ed   : > { %935 = vmatpush.bf16.xpose.msrb.mxu3 %v905_v22 }
 0x1ef   : > { %785 = vmatpush.bf16.msrb.mxu0 %v767_v5 }
 0x1f0   : > { %2501 = vmatpush.bf16.msrb.mxu1 %v767_v5  ;;  %2502 = vmatpush.bf16.msra.mxu2 %v767_v5  ;;  %v1297_v5 = vsel %vm508_vm1, %v1250_v38, 0  ;;  %v832_v38 = vld [vmem:[#allocation2 + $0x80] sm:$0xff] }
 0x1f2   : > { %v1138_v52 = vpop.permute.xlu0 %1137 }
 0x1f3   : > { %786 = vmatpush.bf16.msrb.mxu0 %v3174_v24  ;;  %v1142_v60 = vpop.permute.xlu1 %1141 }
 0x1f4   : > { %2503 = vmatpush.bf16.msrb.mxu1 %v3174_v24  ;;  %2504 = vmatpush.bf16.msra.mxu2 %v3174_v24  ;;  %v1662_v24 = vsel %vm508_vm1, %v3237_v41, 0  ;;  %v1659_v41 = vsel %vm508_vm1, %v3314_v16, 0 }
 0x1f5   : > { %1670 = vmatpush.bf16.xpose.msra.mxu3 %v1668_v62 }
 0x1f6   : > { %2437 = vmatmul.msk.bf16.vlgmr.msrb.gmra.mxu3 %vm508_vm1, %v3288_v0 }
 0x1f7   : > { %787 = vmatpush.bf16.msrb.mxu0 %v3303_v9 }
 0x1f8   : > { %2505 = vmatpush.bf16.msrb.mxu1 %v3303_v9  ;;  %2506 = vmatpush.bf16.msra.mxu2 %v3303_v9 }
 0x1fa   : > { %v1144_v0 = vpop.permute.xlu0 %1143 }
 0x1fb   : > { %2434 = vmatmul.msk.bf16.gmra.mxu1 %vm508_vm1, %v3080_v57  ;;  %788 = vmatpush.bf16.msrb.mxu0 %v3266_v56  ;;  %v3383_v3 = vpop.permute.xlu1 %1231 }
 0x1fc   : > { %2507 = vmatpush.bf16.msrb.mxu1 %v3266_v56  ;;  %2508 = vmatpush.bf16.msra.mxu2 %v3266_v56  ;;  %v1140_v56 = vpop.permute.xlu2 %1139 }
 0x1fd   : > { %1671 = vmatpush.bf16.xpose.msra.mxu3 %v1665_v47  ;;  %v439_v47 = vld [vmem:[#allocation2 + $0x18] sm:$0xff] }
 0x1ff   : > { %789 = vmatpush.bf16.msrb.mxu0 %v3190_v28 }
 0x200   : > { %2509 = vmatpush.bf16.msrb.mxu1 %v3190_v28  ;;  %2510 = vmatpush.bf16.msra.mxu2 %v3190_v28  ;;  %v1656_v28 = vsel %vm508_vm1, %v3264_v55, 0  ;;  %v1288_v55 = vsel %vm508_vm1, %v3246_v46, 0  ;;  %v436_v46 = vld [vmem:[#allocation2] sm:$0xff] }
 0x203   : > { %1153 = vmatpush.bf16.msra.mxu0 %v1144_v0  ;;  %v3394_v9 = vpop.permute.xlu1 %1602 }
 0x204   : > { %1299 = vmatpush.bf16.xpose.msrb.mxu2 %v1297_v5  ;;  %v1132_v16 = vpop.permute.xlu2 %1131 }
 0x205   : > { %1672 = vmatpush.bf16.xpose.msra.mxu3 %v1662_v24 }
 0x206   : > { %2438 = vmatmul.msk.bf16.gmra.mxu3 %vm508_vm1, %v3239_v42  ;;  %v1136_v42 = vpop.permute.xlu0 %1135 }
 0x207   : > { %1154 = vmatpush.bf16.msra.mxu0 %v1142_v60 }
 0x20b   : > { %1155 = vmatpush.bf16.msra.mxu0 %v1140_v56  ;;  %2435 = vmatmul.msk.bf16.gmra.mxu1 %vm508_vm1, %v3106_v18  ;;  %v1134_v15 = vpop.permute.xlu1 %1133  ;;  %v834_v56 = vld [vmem:[#allocation2 + $0x90] sm:$0xff] }
 0x20c   : > { %1300 = vmatpush.bf16.xpose.msrb.mxu2 %v1294_v7  ;;  %v835_v7 = vld [vmem:[#allocation2 + $0x98] sm:$0xff] }
 0x20d   : > { %1673 = vmatpush.bf16.xpose.msra.mxu3 %v1659_v41 }
 0x20f   : > { %1156 = vmatpush.bf16.msra.mxu0 %v1138_v52 }
 0x213   : > { %1157 = vmatpush.bf16.msra.mxu0 %v1136_v42 }
 0x214   : > { %1301 = vmatpush.bf16.xpose.msrb.mxu2 %v1291_v11 }
 0x215   : > { %1674 = vmatpush.bf16.xpose.msra.mxu3 %v1656_v28 }
 0x216   : > { %2439 = vmatmul.msk.bf16.gmra.mxu3 %vm508_vm1, %v3166_v23  ;;  %v1285_v23 = vsel %vm508_vm1, %v3278_v61, 0 }
 0x217   : > { %1158 = vmatpush.bf16.msra.mxu0 %v1134_v15 }
 0x21b   : > { %1159 = vmatpush.bf16.msra.mxu0 %v1132_v16  ;;  %2436 = vmatmul.msk.bf16.gmra.mxu1 %vm508_vm1, %v3108_v19  ;;  %v440_v16 = vld [vmem:[#allocation2 + $0x20] sm:$0xff] }
 0x21c   : > { %1302 = vmatpush.bf16.xpose.msrb.mxu2 %v1288_v55 }
 0x21d   : > { %1675 = vmatpush.bf16.xpose.msra.mxu3 %v1653_v30  ;;  %v836_v30 = vld [vmem:[#allocation2 + $0xa0] sm:$0xff] }
 0x224   : > { %1303 = vmatpush.bf16.xpose.msrb.mxu2 %v1285_v23 }
 0x225   : > { %1676 = vmatpush.bf16.xpose.msra.mxu3 %v1650_v34 }
 0x226   : > { %2440 = vmatmul.msk.bf16.gmra.mxu3 %vm508_vm1, %v3182_v25 }
 0x228   : > { %v566_v14 = vpop.f32.mrf.mxu1 }
 0x229   : > { %v3420_v39 = vadd.f32 %v566_v14, %v436_v46  ;;  %v451_v14 = vld [vmem:[#allocation2 + $0x78] sm:$0xff] }
 0x22b   : > { %606 = vmax.xlane.f32.xlu0 %v3420_v39 }
 0x22c   : > { %1304 = vmatpush.bf16.xpose.msrb.mxu2 %v1282_v29  ;;  %v441_v29 = vld [vmem:[#allocation2 + $0x28] sm:$0xff] }
 0x22d   : > { %1677 = vmatpush.bf16.xpose.msra.mxu3 %v1647_v6 }
 0x230   : > { %v568_v61 = vpop.f32.mrf.mxu1 }
 0x231   : > { %v3425_v25 = vadd.f32 %v568_v61, %v437_v13 }
 0x233   : > { %608 = vmax.xlane.f32.xlu1 %v3425_v25 }
 0x234   : > { %1305 = vmatpush.bf16.xpose.msrb.mxu2 %v1279_v44 }
 0x236   : > { %2441 = vmatmul.msk.bf16.gmra.mxu3 %vm508_vm1, %v3309_v12 }
 0x238   : > { %v571_v20 = vpop.f32.mrf.mxu1 }
 0x23c   : > { %1306 = vmatpush.bf16.xpose.msrb.mxu2 %v1276_v1 }
 0x240   : > { %v573_v49 = vpop.f32.mrf.mxu1 }
 0x246   : > { %2442 = vmatmul.msk.bf16.gmra.mxu3 %vm508_vm1, %v3226_v37 }
 0x248   : > { %v576_v21 = vpop.f32.mrf.mxu1 }
 0x249   : > { %v3474_v46 = vadd.f32 %v576_v21, %v440_v16 }
 0x250   : > { %v578_v53 = vpop.f32.mrf.mxu1 }
 0x256   : > { %2443 = vmatmul.msk.bf16.gmra.mxu3 %vm508_vm1, %v3255_v51  ;;  %v833_v51 = vld [vmem:[#allocation2 + $0x88] sm:$0xff] }
 0x258   : > { %v3436_v10 = vpop.f32.mrf.mxu1 }
 0x260   : > { %v3438_v58 = vpop.f32.mrf.mxu1 }
 0x266   : > { %2444 = vmatmul.msk.bf16.gmra.mxu3 %vm508_vm1, %v3356_v54  ;;  %v3451_v54 = vadd.f32 %v573_v49, %v439_v47  ;;  %v838_v49 = vld [vmem:[#allocation2 + $0xb0] sm:$0xff] }
 0x268   : > { %v3442_v12 = vpop.f32.mrf.mxu1 }
 0x270   : > { %v588_v59 = vpop.f32.mrf.mxu1 }
 0x276   : > { %2453 = vmatmul.msk.bf16.vlgmr.msra.gmra.mxu3 %vm508_vm1, %v3323_v26  ;;  %v438_v26 = vld [vmem:[#allocation2 + $0x10] sm:$0xff] }
 0x277   : > { %v3457_v41 = vadd.f32 %v571_v20, %v438_v26  ;;  %v3481_v20 = vadd.f32 %v578_v53, %v441_v29  ;;  %v445_v53 = vld [vmem:[#allocation2 + $0x48] sm:$0xff]  ;;  %v447_v26 = vld [vmem:[#allocation2 + $0x58] sm:$0xff] }
 0x278   : > { %v591_v22 = vpop.f32.mrf.mxu1 }
 0x279   : > { %v937_v37 = vpop.f32.mrf.mxu3 }
 0x27a   : > { %v3446_v62 = vadd.f32 %v937_v37, %v832_v38  ;;  %v839_v37 = vld [vmem:[#allocation2 + $0xb8] sm:$0xff] }
 0x27c   : > { %977 = vmax.xlane.f32.xlu0 %v3446_v62 }
 0x280   : > { %v593_v60 = vpop.f32.mrf.mxu1 }
 0x281   : > { %v939_v52 = vpop.f32.mrf.mxu3 }
 0x282   : > { %v3449_v24 = vadd.f32 %v939_v52, %v833_v51  ;;  %v3493_v51 = vpop.permute.xlu0 %1233  ;;  %v3497_v52 = vadd.f32 %v588_v59, %v445_v53 }
 0x284   : > { %979 = vmax.xlane.f32.xlu2 %v3449_v24  ;;  %612 = vmax.xlane.f32.xlu0 %v3451_v54 }
 0x286   : > { %2454 = vmatmul.msk.bf16.gmra.mxu3 %vm508_vm1, %v3295_v4  ;;  %v446_v4 = vld [vmem:[#allocation2 + $0x50] sm:$0xff] }
 0x287   : > { %v3470_v23 = vadd.f32 %v591_v22, %v446_v4  ;;  %v450_v4 = vld [vmem:[#allocation2 + $0x70] sm:$0xff] }
 0x288   : > { %v596_v5 = vpop.f32.mrf.mxu1 }
 0x289   : > { %v942_v0 = vpop.f32.mrf.mxu3 }
 0x28a   : > { %v3462_v11 = vadd.f32 %v942_v0, %v834_v56  ;;  %v1605_v0 = vpop.permute.xlu1 %1604 }
 0x28c   : > { %610 = vmax.xlane.f32.xlu2 %v3457_v41 }
 0x290   : > { %v3460_v42 = vpop.f32.mrf.mxu1 }
 0x291   : > { %v944_v28 = vpop.f32.mrf.mxu3 }
 0x292   : > { %v3464_v15 = vadd.f32 %v944_v28, %v835_v7  ;;  %v3506_v28 = vadd.f32 %v593_v60, %v447_v26 }
 0x294   : > { %983 = vmax.xlane.f32.xlu0 %v3464_v15  ;;  %981 = vmax.xlane.f32.xlu2 %v3462_v11 }
 0x296   : > { %2455 = vmatmul.msk.bf16.gmra.mxu3 %vm508_vm1, %v3327_v32  ;;  %v837_v32 = vld [vmem:[#allocation2 + $0xa8] sm:$0xff] }
 0x298   : > { %v601_v34 = vpop.f32.mrf.mxu1 }
 0x299   : > { %v947_v55 = vpop.f32.mrf.mxu3 }
 0x29a   : > { %v3472_v6 = vadd.f32 %v947_v55, %v836_v30  ;;  %v448_v30 = vld [vmem:[#allocation2 + $0x60] sm:$0xff]  ;;  %v3511_v55 = vadd.f32 %v601_v34, %v450_v4 }
 0x29c   : > { %985 = vmax.xlane.f32.xlu1 %v3472_v6  ;;  %626 = vmax.xlane.f32.xlu0 %v3470_v23 }
 0x29d   : > { %614 = vmax.xlane.f32.xlu2 %v3474_v46 }
 0x29e   : > { %v607_v7 = vpop.xlane.xlu0 %606 }
 0x29f   : > { %v638_v59 = vsub.f32 %v3420_v39, %v607_v7  ;;  %v449_v39 = vld [vmem:[#allocation2 + $0x68] sm:$0xff] }
 0x2a0   : > { %v603_v61 = vpop.f32.mrf.mxu1  ;;  %v3523_v34 = vadd.f32 %v3460_v42, %v449_v39 }
 0x2a1   : > { %v949_v13 = vpop.f32.mrf.mxu3  ;;  %v3479_v44 = vadd.f32 %v603_v61, %v451_v14  ;;  %v654_v16 = vmul.f32 1.442695, %v638_v59  ;;  %v3513_v14 = vadd.f32 %v596_v5, %v448_v30 }
 0x2a2   : > { %v3483_v1 = vadd.f32 %v949_v13, %v837_v32 }
 0x2a3   : > { %2668 = vpow2.f32 %v654_v16 }
 0x2a4   : > { %616 = vmax.xlane.f32.xlu1 %v3481_v20  ;;  %636 = vmax.xlane.f32.xlu0 %v3479_v44 }
 0x2a5   : > { %987 = vmax.xlane.f32.xlu2 %v3483_v1 }
 0x2a6   : > { %2456 = vmatmul.msk.bf16.gmra.mxu3 %vm508_vm1, %v3335_v40  ;;  %v444_v40 = vld [vmem:[#allocation2 + $0x40] sm:$0xff] }
 0x2a7   : > { %v3504_v56 = vadd.f32 %v3442_v12, %v444_v40 }
 0x2a9   : > { %v952_v21 = vpop.f32.mrf.mxu3  ;;  %v3520_v29 = vpop.eup %2668 }
 0x2aa   : > { %v3490_v38 = vadd.f32 %v952_v21, %v838_v49 }
 0x2ad   : > { %989 = vmax.xlane.f32.xlu2 %v3490_v38 }
 0x2b1   : > { %v954_v22 = vpop.f32.mrf.mxu3 }
 0x2b2   : > { %v3495_v47 = vadd.f32 %v954_v22, %v839_v37 }
 0x2b4   : > { %991 = vmax.xlane.f32.xlu1 %v3495_v47 }
 0x2b5   : > { %624 = vmax.xlane.f32.xlu2 %v3497_v52 }
 0x2b6   : > { %2457 = vmatmul.msk.bf16.gmra.mxu3 %vm508_vm1, %v3337_v43  ;;  %v609_v43 = vpop.xlane.xlu1 %608 }
 0x2b7   : > { %v639_v12 = vsub.f32 %v3425_v25, %v609_v43 }
 0x2b9   : > { %v656_v60 = vmul.f32 1.442695, %v639_v12 }
 0x2bb   : > { %2670 = vpow2.f32 %v656_v60 }
 0x2bc   : > { %622 = vmax.xlane.f32.xlu1 %v3504_v56 }
 0x2bd   : > { %628 = vmax.xlane.f32.xlu2 %v3506_v28 }
 0x2c1   : > { %v3527_v5 = vpop.eup %2670 }
 0x2c4   : > { %634 = vmax.xlane.f32.xlu1 %v3511_v55 }
 0x2c5   : > { %630 = vmax.xlane.f32.xlu2 %v3513_v14 }
 0x2c6   : > { %2458 = vmatmul.msk.bf16.gmra.mxu3 %vm508_vm1, %v3380_v31 }
 0x2cc   : > { %686 = vadd.xlane.f32.xlu1 %v3520_v29 }
 0x2cd   : > { %632 = vmax.xlane.f32.xlu2 %v3523_v34 }
 0x2d4   : > { %688 = vadd.xlane.f32.xlu1 %v3527_v5 }
 0x2d6   : > { %2459 = vmatmul.msk.bf16.gmra.mxu3 %vm508_vm1, %v3394_v9 }
 0x2e6   : > { %2460 = vmatmul.msk.bf16.gmra.mxu3 %vm508_vm1, %v1605_v0  ;;  %v3548_v0 = vpop.f32.mrf.mxu3 }
 0x2ee   : > { %v3561_v39 = vpop.f32.mrf.mxu3 }
 0x2ef   : > { %v978_v31 = vpop.xlane.xlu0 %977 }
 0x2f0   : > { %v1009_v25 = vsub.f32 %v3446_v62, %v978_v31 }
 0x2f2   : > { %v1025_v32 = vmul.f32 1.442695, %v1009_v25 }
 0x2f4   : > { %2672 = vpow2.f32 %v1025_v32 }
 0x2f7   : > { %v980_v42 = vpop.xlane.xlu2 %979  ;;  %v613_v9 = vpop.xlane.xlu0 %612 }
 0x2f8   : > { %v1010_v13 = vsub.f32 %v3449_v24, %v980_v42  ;;  %v641_v62 = vsub.f32 %v3451_v54, %v613_v9 }
 0x2fa   : > { %v3535_v61 = vpop.eup %2672  ;;  %v1027_v49 = vmul.f32 1.442695, %v1010_v13  ;;  %v660_v24 = vmul.f32 1.442695, %v641_v62 }
 0x2fb   : > { %1057 = vadd.xlane.f32.xlu0 %v3535_v61 }
 0x2fc   : > { %2674 = vpow2.f32 %v1027_v49  ;;  %v3571_v49 = vpop.f32.mrf.mxu3 }
 0x2ff   : > { %v611_v21 = vpop.xlane.xlu2 %610 }
 0x300   : > { %v640_v37 = vsub.f32 %v3457_v41, %v611_v21 }
 0x302   : > { %v3539_v53 = vpop.eup %2674  ;;  %v658_v22 = vmul.f32 1.442695, %v640_v37 }
 0x303   : > { %1059 = vadd.xlane.f32.xlu2 %v3539_v53 }
 0x304   : > { %2676 = vpow2.f32 %v658_v22  ;;  %v3580_v22 = vpop.f32.mrf.mxu3 }
 0x305   : > { %2678 = vpow2.f32 %v660_v24 }
 0x307   : > { %v3543_v40 = vpop.xlane.xlu2 %981  ;;  %v3550_v41 = vpop.xlane.xlu0 %983 }
 0x30a   : > { %v3545_v26 = vpop.eup %2676 }
 0x30b   : > { %690 = vadd.xlane.f32.xlu2 %v3545_v26  ;;  %v3555_v30 = vpop.eup %2678 }
 0x30f   : > { %v3552_v7 = vpop.xlane.xlu1 %985  ;;  %v627_v60 = vpop.xlane.xlu0 %626 }
 0x310   : > { %v615_v59 = vpop.xlane.xlu2 %614  ;;  %v648_v32 = vsub.f32 %v3470_v23, %v627_v60 }
 0x311   : > { %v642_v4 = vsub.f32 %v3474_v46, %v615_v59 }
 0x312   : > { %v674_v46 = vmul.f32 1.442695, %v648_v32 }
 0x313   : > { %v662_v54 = vmul.f32 1.442695, %v642_v4  ;;  %692 = vadd.xlane.f32.xlu2 %v3555_v30 }
 0x315   : > { %2680 = vpow2.f32 %v662_v54 }
 0x317   : > { %v617_v16 = vpop.xlane.xlu1 %616  ;;  %v637_v4 = vpop.xlane.xlu0 %636 }
 0x318   : > { %v3558_v43 = vpop.xlane.xlu2 %987  ;;  %v643_v12 = vsub.f32 %v3481_v20, %v617_v16 }
 0x31a   : > { %v664_v31 = vmul.f32 1.442695, %v643_v12 }
 0x31b   : > { %v3563_v25 = vpop.eup %2680 }
 0x31c   : > { %2682 = vpow2.f32 %v664_v31  ;;  %694 = vadd.xlane.f32.xlu1 %v3563_v25  ;;  %v3588_v31 = vpop.f32.mrf.mxu3 }
 0x31d   : > { %2684 = vpow2.f32 %v674_v46 }
 0x320   : > { %v3567_v42 = vpop.xlane.xlu2 %989 }
 0x322   : > { %v3569_v13 = vpop.eup %2682 }
 0x323   : > { %696 = vadd.xlane.f32.xlu0 %v3569_v13  ;;  %v3577_v9 = vpop.eup %2684 }
 0x327   : > { %v3574_v20 = vpop.xlane.xlu1 %991 }
 0x328   : > { %v625_v21 = vpop.xlane.xlu2 %624 }
 0x329   : > { %v647_v37 = vsub.f32 %v3497_v52, %v625_v21  ;;  %v653_v52 = vsub.f32 %v3479_v44, %v637_v4  ;;  %v969_v4 = vpop.f32.mrf.mxu3 }
 0x32b   : > { %v672_v23 = vmul.f32 1.442695, %v647_v37  ;;  %706 = vadd.xlane.f32.xlu0 %v3577_v9  ;;  %v684_v46 = vmul.f32 1.442695, %v653_v52 }
 0x32d   : > { %2686 = vpow2.f32 %v672_v23 }
 0x32f   : > { %v623_v62 = vpop.xlane.xlu1 %622 }
 0x330   : > { %v629_v24 = vpop.xlane.xlu2 %628  ;;  %v646_v59 = vsub.f32 %v3504_v56, %v623_v62 }
 0x331   : > { %v649_v54 = vsub.f32 %v3506_v28, %v629_v24 }
 0x332   : > { %v670_v16 = vmul.f32 1.442695, %v646_v59 }
 0x333   : > { %v3584_v12 = vpop.eup %2686  ;;  %v676_v60 = vmul.f32 1.442695, %v649_v54 }
 0x334   : > { %2688 = vpow2.f32 %v670_v16  ;;  %704 = vadd.xlane.f32.xlu1 %v3584_v12 }
 0x335   : > { %2690 = vpow2.f32 %v676_v60 }
 0x336   : > { %2692 = vpow2.f32 %v684_v46 }
 0x337   : > { %v635_v32 = vpop.xlane.xlu1 %634 }
 0x338   : > { %v631_v21 = vpop.xlane.xlu2 %630  ;;  %v652_v44 = vsub.f32 %v3511_v55, %v635_v32  ;;  %v1011_v55 = vsub.f32 %v3462_v11, %v3543_v40  ;;  %v1013_v11 = vsub.f32 %v3472_v6, %v3552_v7 }
 0x339   : > { %v650_v56 = vsub.f32 %v3513_v14, %v631_v21  ;;  %v972_v21 = vpop.f32.mrf.mxu3 }
 0x33a   : > { %v3591_v37 = vpop.eup %2688  ;;  %v682_v24 = vmul.f32 1.442695, %v652_v44  ;;  %v1029_v32 = vmul.f32 1.442695, %v1011_v55  ;;  %v840_v44 = vld [vmem:[#allocation2 + $0xc0] sm:$0xff] }
 0x33b   : > { %v3593_v28 = vpop.eup %2690  ;;  %v678_v23 = vmul.f32 1.442695, %v650_v56  ;;  %702 = vadd.xlane.f32.xlu2 %v3591_v37  ;;  %v3620_v55 = vadd.f32 %v3548_v0, %v840_v44  ;;  %v845_v0 = vld [vmem:[#allocation2 + $0xe8] sm:$0xff] }
 0x33c   : > { %708 = vadd.xlane.f32.xlu1 %v3593_v28  ;;  %v3599_v14 = vpop.eup %2692 }
 0x33d   : > { %2694 = vpow2.f32 %v678_v23  ;;  %v1012_v23 = vsub.f32 %v3464_v15, %v3550_v41 }
 0x33e   : > { %2696 = vpow2.f32 %v682_v24 }
 0x33f   : > { %v687_v62 = vpop.xlane.xlu1 %686 }
 0x340   : > { %v633_v59 = vpop.xlane.xlu2 %632 }
 0x341   : > { %v651_v54 = vsub.f32 %v3523_v34, %v633_v59  ;;  %v1031_v59 = vmul.f32 1.442695, %v1012_v23  ;;  %v974_v6 = vpop.f32.mrf.mxu3  ;;  %v442_v23 = vld [vmem:[#allocation2 + $0x30] sm:$0xff] }
 0x343   : > { %v3601_v16 = vpop.eup %2694  ;;  %v680_v60 = vmul.f32 1.442695, %v651_v54  ;;  %716 = vadd.xlane.f32.xlu2 %v3599_v14  ;;  %v1033_v54 = vmul.f32 1.442695, %v1013_v11  ;;  %v844_v11 = vld [vmem:[#allocation2 + $0xe0] sm:$0xff] }
 0x344   : > { %710 = vadd.xlane.f32.xlu0 %v3601_v16  ;;  %v3607_v46 = vpop.eup %2696 }
 0x345   : > { %2698 = vpow2.f32 %v680_v60 }
 0x346   : > { %2700 = vrcp.f32 %v687_v62 }
 0x347   : > { %v689_v52 = vpop.xlane.xlu1 %688 }
 0x348   : > { %2702 = vrcp.f32 %v689_v52 }
 0x349   : > { %2704 = vpow2.f32 %v1029_v32  ;;  %v3634_v7 = vpop.f32.mrf.mxu3  ;;  %v3639_v32 = vadd.f32 %v969_v4, %v845_v0  ;;  %v841_v0 = vld [vmem:[#allocation2 + $0xc8] sm:$0xff] }
 0x34a   : > { %2706 = vpow2.f32 %v1031_v59 }
 0x34b   : > { %v3609_v34 = vpop.eup %2698  ;;  %2708 = vpow2.f32 %v1033_v54 }
 0x34c   : > { %v2701_v56 = vpop.eup %2700  ;;  %712 = vadd.xlane.f32.xlu1 %v3609_v34  ;;  %714 = vadd.xlane.f32.xlu0 %v3607_v46 }
 0x34d   : > { %v734_v62 = vmul.f32 %v2701_v56, %v3520_v29  ;;  %v1016_v56 = vsub.f32 %v3495_v47, %v3574_v20  ;;  %v846_v20 = vld [vmem:[#allocation2 + $0xf0] sm:$0xff] }
 0x34e   : > { %v2703_v40 = vpop.eup %2702  ;;  %v3663_v54 = vadd.f32 %v972_v21, %v846_v20  ;;  %v1014_v21 = vsub.f32 %v3483_v1, %v3558_v43 }
 0x34f   : > { %v735_v24 = vmul.f32 %v2703_v40, %v3527_v5  ;;  %v3622_v15 = vpop.eup %2704  ;;  %v843_v5 = vld [vmem:[#allocation2 + $0xd8] sm:$0xff]  ;;  %v1039_v44 = vmul.f32 1.442695, %v1016_v56 }
 0x350   : > { %v3626_v41 = vpop.eup %2706  ;;  %v3637_v52 = vadd.f32 %v3580_v22, %v843_v5  ;;  %v847_v22 = vld [vmem:[#allocation2 + $0xf8] sm:$0xff] }
 0x351   : > { %v750_v60 = vpack.c.bf16 %v735_v24, %v734_v62  ;;  %v3628_v29 = vpop.eup %2708  ;;  %v1681_v40 = vpop.f32.mrf.mxu3  ;;  %v3646_v62 = vadd.f32 %v3436_v10, %v442_v23  ;;  %v3649_v24 = vadd.f32 %v3588_v31, %v844_v11  ;;  %2710 = vpow2.f32 %v1039_v44  ;;  %v1575_v31 = vld [vmem:[#allocation2 + $0x188] sm:$0xff]  ;;  %v1577_v56 = vld [vmem:[#allocation2 + $0x198] sm:$0xff]  ;;  %v842_v44 = vld [vmem:[#allocation2 + $0xd0] sm:$0xff] }
 0x352   : > { %v3653_v4 = vadd.f32 %v974_v6, %v847_v22  ;;  %v3670_v23 = vadd.f32 %v3561_v39, %v841_v0  ;;  %v1578_v22 = vld [vmem:[#allocation2 + $0x1a0] sm:$0xff]  ;;  %v1015_v0 = vsub.f32 %v3490_v38, %v3567_v42 }
 0x353   : > { %790 = vmatmul.bf16.vlgmr.msrb.gmra.mxu0 %v750_v60  ;;  %v3665_v60 = vadd.f32 %v1681_v40, %v1575_v31  ;;  %v1035_v31 = vmul.f32 1.442695, %v1014_v21 }
 0x354   : > { %993 = vmax.xlane.f32.xlu1 %v3620_v55  ;;  %1061 = vadd.xlane.f32.xlu0 %v3622_v15  ;;  %v1037_v21 = vmul.f32 1.442695, %v1015_v0 }
 0x355   : > { %4386 = vst [vmem:[#allocation5_spill] sm:$0xff] %v3665_v60 }
 0x357   : > { %v3655_v59 = vpop.eup %2710 }
 0x359   : > { %v3657_v47 = vpop.f32.mrf.mxu3 }
 0x35b   : > { %1129 = vrot.lane.b32.xlu2 %v3092_v2, %s2977_s26 }
 0x35c   : > { %1063 = vadd.xlane.f32.xlu1 %v3626_v41  ;;  %1065 = vadd.xlane.f32.xlu0 %v3628_v29 }
 0x361   : > { %v1686_v6 = vpop.f32.mrf.mxu3 }
 0x362   : > { %v3672_v11 = vadd.f32 %v1686_v6, %v1577_v56 }
 0x364   : > { %999 = vmax.xlane.f32.xlu1 %v3637_v52  ;;  %1003 = vmax.xlane.f32.xlu0 %v3639_v32 }
 0x369   : > { %v1689_v20 = vpop.f32.mrf.mxu3 }
 0x36a   : > { %v3681_v39 = vadd.f32 %v1689_v20, %v1578_v22 }
 0x36c   : > { %1001 = vmax.xlane.f32.xlu1 %v3649_v24  ;;  %618 = vmax.xlane.f32.xlu0 %v3646_v62 }
 0x36e   : > { %v1058_v43 = vpop.xlane.xlu0 %1057 }
 0x374   : > { %1071 = vadd.xlane.f32.xlu1 %v3655_v59  ;;  %1007 = vmax.xlane.f32.xlu0 %v3653_v4 }
 0x376   : > { %v3661_v10 = vpop.xlane.xlu2 %1059 }
 0x37c   : > { %1005 = vmax.xlane.f32.xlu1 %v3663_v54  ;;  %1721 = vmax.xlane.f32.xlu0 %v3665_v60  ;;  %v3679_v60 = vadd.f32 %v3571_v49, %v842_v44 }
 0x37e   : > { %v691_v5 = vpop.xlane.xlu2 %690 }
 0x37f   : > { %2712 = vrcp.f32 %v691_v5 }
 0x384   : > { %1725 = vmax.xlane.f32.xlu0 %v3672_v11  ;;  %995 = vmax.xlane.f32.xlu2 %v3670_v23 }
 0x385   : > { %v2713_v6 = vpop.eup %2712 }
 0x386   : > { %v693_v40 = vpop.xlane.xlu2 %692  ;;  %v736_v5 = vmul.f32 %v2713_v6, %v3545_v26 }
 0x387   : > { %2714 = vrcp.f32 %v693_v40 }
 0x388   : > { %2716 = vpow2.f32 %v1035_v31  ;;  %v443_v31 = vld [vmem:[#allocation2 + $0x38] sm:$0xff] }
 0x389   : > { %2718 = vpow2.f32 %v1037_v21  ;;  %v3700_v0 = vadd.f32 %v3438_v58, %v443_v31 }
 0x38c   : > { %1727 = vmax.xlane.f32.xlu0 %v3681_v39  ;;  %997 = vmax.xlane.f32.xlu2 %v3679_v60 }
 0x38d   : > { %v2715_v1 = vpop.eup %2714 }
 0x38e   : > { %v737_v56 = vmul.f32 %v2715_v1, %v3555_v30  ;;  %v3689_v44 = vpop.eup %2716 }
 0x38f   : > { %v695_v40 = vpop.xlane.xlu1 %694  ;;  %v3692_v42 = vpop.eup %2718 }
 0x390   : > { %v751_v49 = vpack.c.bf16 %v737_v56, %v736_v5  ;;  %2720 = vrcp.f32 %v695_v40 }
 0x392   : > { %795 = vmatmul.bf16.gmra.mxu0 %v751_v49 }
 0x394   : > { %1067 = vadd.xlane.f32.xlu2 %v3689_v44 }
 0x396   : > { %v697_v38 = vpop.xlane.xlu0 %696  ;;  %v2721_v22 = vpop.eup %2720 }
 0x397   : > { %2722 = vrcp.f32 %v697_v38  ;;  %v738_v30 = vmul.f32 %v2721_v22, %v3563_v25 }
 0x39c   : > { %1069 = vadd.xlane.f32.xlu2 %v3692_v42 }
 0x39d   : > { %v2723_v26 = vpop.eup %2722 }
 0x39e   : > { %v739_v20 = vmul.f32 %v2723_v26, %v3569_v13  ;;  %v707_v13 = vpop.xlane.xlu0 %706 }
 0x3a0   : > { %1885 = vrot.lane.b32.xlu0 %v3108_v19, %s2978_s27  ;;  %v752_v6 = vpack.c.bf16 %v739_v20, %v738_v30 }
 0x3a2   : > { %800 = vmatmul.bf16.gmra.mxu0 %v752_v6 }
 0x3a4   : > { %620 = vmax.xlane.f32.xlu2 %v3700_v0 }
 0x3a7   : > { %v705_v1 = vpop.xlane.xlu1 %704 }
 0x3a8   : > { %1512 = vrot.lane.b32.xlu0 %v3106_v18, %s2979_s28  ;;  %2724 = vrcp.f32 %v705_v1 }
 0x3ae   : > { %v703_v25 = vpop.xlane.xlu2 %702  ;;  %v2725_v5 = vpop.eup %2724 }
 0x3af   : > { %2726 = vrcp.f32 %v703_v25  ;;  %v743_v49 = vmul.f32 %v2725_v5, %v3584_v12  ;;  %v709_v40 = vpop.xlane.xlu1 %708 }
 0x3b0   : > { %1510 = vrot.lane.b32.xlu0 %v3080_v57, %s2979_s28  ;;  %2728 = vrcp.f32 %v3661_v10 }
 0x3b1   : > { %2730 = vrcp.f32 %v1058_v43 }
 0x3b2   : > { %2732 = vrcp.f32 %v709_v40 }
 0x3b3   : > { %2734 = vrcp.f32 %v707_v13 }
 0x3b5   : > { %v2727_v56 = vpop.eup %2726 }
 0x3b6   : > { %v717_v58 = vpop.xlane.xlu2 %716  ;;  %v742_v21 = vmul.f32 %v2727_v56, %v3591_v37  ;;  %v2729_v26 = vpop.eup %2728 }
 0x3b7   : > { %v711_v38 = vpop.xlane.xlu0 %710  ;;  %v2731_v30 = vpop.eup %2730  ;;  %v1106_v20 = vmul.f32 %v2729_v26, %v3539_v53 }
 0x3b8   : > { %1881 = vrot.lane.b32.xlu0 %v3080_v57, %s2978_s27  ;;  %v754_v22 = vpack.c.bf16 %v743_v49, %v742_v21  ;;  %v1105_v10 = vmul.f32 %v2731_v30, %v3535_v61  ;;  %v2733_v6 = vpop.eup %2732 }
 0x3b9   : > { %v2735_v57 = vpop.eup %2734  ;;  %v745_v1 = vmul.f32 %v2733_v6, %v3593_v28 }
 0x3ba   : > { %810 = vmatmul.bf16.vlgmr.msra.gmra.mxu2 %v754_v22  ;;  %v1121_v12 = vpack.c.bf16 %v1106_v20, %v1105_v10  ;;  %v744_v25 = vmul.f32 %v2735_v57, %v3577_v9  ;;  %v3719_v22 = vpop.f32.mrf.mxu3 }
 0x3bc   : > { %v755_v61 = vpack.c.bf16 %v745_v1, %v744_v25  ;;  %v1581_v25 = vld [vmem:[#allocation2 + $0x1b8] sm:$0xff] }
 0x3be   : > { %v1130_v43 = vpop.permute.xlu2 %1129 }
 0x3bf   : > { %v715_v31 = vpop.xlane.xlu0 %714  ;;  %v713_v37 = vpop.xlane.xlu1 %712  ;;  %1160 = vmatpush.bf16.msra.mxu0 %v1130_v43 }
 0x3c0   : > { %1508 = vrot.lane.b32.xlu0 %v3070_v45, %s2979_s28  ;;  %2736 = vrcp.f32 %v713_v37 }
 0x3c2   : > { %1161 = vmatmul.bf16.vlgmr.msra.gmra.mxu0 %v1121_v12  ;;  %v3730_v6 = vpop.f32.mrf.mxu3 }
 0x3c6   : > { %v2737_v40 = vpop.eup %2736 }
 0x3c7   : > { %v1062_v5 = vpop.xlane.xlu0 %1061  ;;  %v994_v53 = vpop.xlane.xlu1 %993 }
 0x3c8   : > { %v1017_v13 = vsub.f32 %v3620_v55, %v994_v53  ;;  %v747_v55 = vmul.f32 %v2737_v40, %v3609_v34 }
 0x3ca   : > { %v1041_v56 = vmul.f32 1.442695, %v1017_v13  ;;  %815 = vmatmul.bf16.gmra.mxu2 %v755_v61 }
 0x3cc   : > { %2738 = vpow2.f32 %v1041_v56 }
 0x3cd   : > { %2740 = vrcp.f32 %v711_v38 }
 0x3ce   : > { %2742 = vrcp.f32 %v1062_v5  ;;  %v1696_v5 = vpop.f32.mrf.mxu3 }
 0x3cf   : > { %v1066_v21 = vpop.xlane.xlu0 %1065  ;;  %v1064_v49 = vpop.xlane.xlu1 %1063 }
 0x3d0   : > { %2744 = vrcp.f32 %v1064_v49 }
 0x3d1   : > { %2746 = vrcp.f32 %v715_v31 }
 0x3d2   : > { %v3721_v28 = vpop.eup %2738  ;;  %2748 = vrcp.f32 %v717_v58 }
 0x3d3   : > { %v2741_v9 = vpop.eup %2740  ;;  %1073 = vadd.xlane.f32.xlu2 %v3721_v28 }
 0x3d4   : > { %v2743_v26 = vpop.eup %2742  ;;  %v746_v30 = vmul.f32 %v2741_v9, %v3601_v16 }
 0x3d5   : > { %v1107_v43 = vmul.f32 %v2743_v26, %v3622_v15  ;;  %v3736_v15 = vadd.f32 %v1696_v5, %v1581_v25 }
 0x3d6   : > { %v2745_v20 = vpop.eup %2744  ;;  %v756_v38 = vpack.c.bf16 %v747_v55, %v746_v30  ;;  %v1574_v30 = vld [vmem:[#allocation2 + $0x180] sm:$0xff] }
 0x3d7   : > { %v3726_v10 = vpop.xlane.xlu0 %1003  ;;  %v1108_v37 = vmul.f32 %v2745_v20, %v3626_v41  ;;  %v2747_v57 = vpop.eup %2746 }
 0x3d8   : > { %v2749_v1 = vpop.eup %2748  ;;  %v748_v16 = vmul.f32 %v2747_v57, %v3607_v46  ;;  %v1000_v56 = vpop.xlane.xlu1 %999 }
 0x3d9   : > { %v1122_v12 = vpack.c.bf16 %v1108_v37, %v1107_v43  ;;  %v749_v53 = vmul.f32 %v2749_v1, %v3599_v14 }
 0x3da   : > { %820 = vmatmul.bf16.gmra.mxu2 %v756_v38 }
 0x3db   : > { %1166 = vmatmul.bf16.gmra.mxu0 %v1122_v12  ;;  %v757_v41 = vpack.c.bf16 %v749_v53, %v748_v16  ;;  %v1022_v53 = vsub.f32 %v3639_v32, %v3726_v10 }
 0x3df   : > { %v3732_v34 = vpop.xlane.xlu0 %618 }
 0x3e0   : > { %v1002_v26 = vpop.xlane.xlu1 %1001 }
 0x3e7   : > { %v3739_v13 = vpop.xlane.xlu0 %1007 }
 0x3e8   : > { %v1072_v5 = vpop.xlane.xlu1 %1071 }
 0x3ea   : > { %1733 = vmax.xlane.f32.xlu0 %v3736_v15  ;;  %825 = vmatmul.bf16.gmra.mxu2 %v757_v41  ;;  %v1051_v41 = vmul.f32 1.442695, %v1022_v53 }
 0x3ef   : > { %v3741_v31 = vpop.xlane.xlu0 %1721 }
 0x3f7   : > { %v996_v58 = vpop.xlane.xlu2 %995  ;;  %v3748_v46 = vpop.xlane.xlu0 %1725 }
 0x3f8   : > { %v1018_v61 = vsub.f32 %v3670_v23, %v996_v58  ;;  %v1020_v23 = vsub.f32 %v3637_v52, %v1000_v56 }
 0x3fa   : > { %v1043_v49 = vmul.f32 1.442695, %v1018_v61  ;;  %2445 = vmatmul.msk.bf16.vlgmr.msrb.gmra.mxu2 %vm508_vm1, %v3316_v17  ;;  %v1021_v17 = vsub.f32 %v3649_v24, %v1002_v26  ;;  %v1047_v38 = vmul.f32 1.442695, %v1020_v23  ;;  %v1006_v26 = vpop.xlane.xlu1 %1005 }
 0x3fc   : > { %2750 = vpow2.f32 %v1043_v49  ;;  %v1049_v43 = vmul.f32 1.442695, %v1021_v17 }
 0x3fe   : > { %1504 = vrot.lane.b32.xlu0 %v3063_v33, %s2979_s28 }
 0x3ff   : > { %v998_v14 = vpop.xlane.xlu2 %997  ;;  %v3761_v37 = vpop.xlane.xlu0 %1727 }
 0x400   : > { %v1019_v40 = vsub.f32 %v3679_v60, %v998_v14  ;;  %v3759_v60 = vadd.f32 %v3634_v7, %v1574_v30 }
 0x402   : > { %v1045_v9 = vmul.f32 1.442695, %v1019_v40  ;;  %v3751_v55 = vpop.eup %2750 }
 0x403   : > { %1075 = vadd.xlane.f32.xlu1 %v3751_v55 }
 0x404   : > { %2752 = vpow2.f32 %v1045_v9  ;;  %v1024_v9 = vsub.f32 %v3653_v4, %v3739_v13 }
 0x405   : > { %2754 = vrcp.f32 %v1066_v21 }
 0x406   : > { %1502 = vrot.lane.b32.xlu0 %v3075_v50, %s2979_s28 }
 0x407   : > { %v1068_v20 = vpop.xlane.xlu2 %1067 }
 0x408   : > { %2756 = vrcp.f32 %v1068_v20  ;;  %v1203_v20 = vld [vmem:[#allocation2 + $0x100] sm:$0xff] }
 0x409   : > { %2758 = vpow2.f32 %v1047_v38 }
 0x40a   : > { %2446 = vmatmul.msk.bf16.gmra.mxu2 %vm508_vm1, %v3286_v63  ;;  %v3765_v52 = vpop.eup %2752  ;;  %2760 = vpow2.f32 %v1049_v43 }
 0x40b   : > { %v2755_v21 = vpop.eup %2754  ;;  %1719 = vmax.xlane.f32.xlu1 %v3759_v60  ;;  %1077 = vadd.xlane.f32.xlu2 %v3765_v52 }
 0x40c   : > { %v1109_v7 = vmul.f32 %v2755_v21, %v3628_v29  ;;  %v1576_v29 = vld [vmem:[#allocation2 + $0x190] sm:$0xff] }
 0x40d   : > { %v3784_v58 = vadd.f32 %v3657_v47, %v1576_v29 }
 0x40e   : > { %v2757_v24 = vpop.eup %2756  ;;  %1873 = vrot.lane.b32.xlu0 %v3075_v50, %s2978_s27  ;;  %v644_v50 = vsub.f32 %v3646_v62, %v3732_v34 }
 0x40f   : > { %v1110_v12 = vmul.f32 %v2757_v24, %v3689_v44  ;;  %v1070_v57 = vpop.xlane.xlu2 %1069  ;;  %v3773_v16 = vpop.eup %2758  ;;  %v1579_v44 = vld [vmem:[#allocation2 + $0x1a8] sm:$0xff] }
 0x410   : > { %v3775_v25 = vpop.eup %2760  ;;  %2762 = vrcp.f32 %v1070_v57  ;;  %v666_v61 = vmul.f32 1.442695, %v644_v50  ;;  %v3789_v32 = vadd.f32 %v3719_v22, %v1579_v44  ;;  %v3848_v24 = vpop.f32.mrf.mxu0 }
 0x411   : > { %v1123_v1 = vpack.c.bf16 %v1110_v12, %v1109_v7  ;;  %2764 = vrcp.f32 %v1072_v5  ;;  %v3858_v50 = vpop.f32.mrf.mxu3 }
 0x412   : > { %v1886_v63 = vpop.permute.xlu0 %1885  ;;  %2766 = vpow2.f32 %v1051_v41 }
 0x413   : > { %1895 = vmatpush.bf16.msrb.mxu0 %v1886_v63  ;;  %1079 = vadd.xlane.f32.xlu1 %v3773_v16  ;;  %2768 = vpow2.f32 %v666_v61 }
 0x414   : > { %1171 = vmatmul.bf16.gmra.mxu0 %v1123_v1  ;;  %1081 = vadd.xlane.f32.xlu2 %v3775_v25 }
 0x416   : > { %v2763_v56 = vpop.eup %2762 }
 0x417   : > { %v621_v10 = vpop.xlane.xlu2 %620  ;;  %v2765_v49 = vpop.eup %2764  ;;  %v1111_v47 = vmul.f32 %v2763_v56, %v3692_v42  ;;  %v1583_v56 = vld [vmem:[#allocation2 + $0x1c8] sm:$0xff] }
 0x418   : > { %v645_v62 = vsub.f32 %v3700_v0, %v621_v10  ;;  %v1112_v34 = vmul.f32 %v2765_v49, %v3655_v59  ;;  %v3796_v40 = vpop.eup %2766  ;;  %v1055_v0 = vmul.f32 1.442695, %v1024_v9  ;;  %v3860_v41 = vpop.f32.mrf.mxu0 }
 0x419   : > { %v3798_v22 = vpop.eup %2768  ;;  %v1701_v10 = vpop.f32.mrf.mxu3 }
 0x41a   : > { %2447 = vmatmul.msk.bf16.gmra.mxu2 %vm508_vm1, %v3329_v36  ;;  %v668_v14 = vmul.f32 1.442695, %v645_v62  ;;  %v1124_v36 = vpack.c.bf16 %v1112_v34, %v1111_v47  ;;  %v3874_v9 = vadd.f32 %v1701_v10, %v1583_v56 }
 0x41b   : > { %1723 = vmax.xlane.f32.xlu1 %v3784_v58 }
 0x41c   : > { %1729 = vmax.xlane.f32.xlu2 %v3789_v32  ;;  %2770 = vpow2.f32 %v668_v14 }
 0x41d   : > { %2772 = vpow2.f32 %v1055_v0 }
 0x420   : > { %v3869_v34 = vpop.f32.mrf.mxu0 }
 0x422   : > { %v3806_v59 = vpop.eup %2770 }
 0x423   : > { %1083 = vadd.xlane.f32.xlu1 %v3796_v40  ;;  %v3809_v42 = vpop.eup %2772 }
 0x424   : > { %1176 = vmatmul.bf16.gmra.mxu0 %v1124_v36  ;;  %698 = vadd.xlane.f32.xlu2 %v3798_v22 }
 0x42a   : > { %2448 = vmatmul.msk.bf16.gmra.mxu2 %vm508_vm1, %v3301_v8 }
 0x42c   : > { %700 = vadd.xlane.f32.xlu2 %v3806_v59 }
 0x434   : > { %1087 = vadd.xlane.f32.xlu2 %v3809_v42 }
 0x43a   : > { %2449 = vmatmul.msk.bf16.gmra.mxu2 %vm508_vm1, %v3340_v35 }
 0x43c   : > { %1514 = vrot.lane.b32.xlu1 %v3108_v19, %s2979_s28  ;;  %v1023_v19 = vsub.f32 %v3663_v54, %v1006_v26 }
 0x43d   : > { %v3816_v4 = vpop.f32.mrf.mxu2 }
 0x43e   : > { %4387 = vst [vmem:[#allocation6_spill] sm:$0xff] %v3816_v4  ;;  %v1053_v23 = vmul.f32 1.442695, %v1023_v19 }
 0x440   : > { %2774 = vpow2.f32 %v1053_v23 }
 0x445   : > { %v3818_v13 = vpop.f32.mrf.mxu2 }
 0x446   : > { %4388 = vst [vmem:[#allocation7_spill] sm:$0xff] %v3818_v13  ;;  %v3839_v17 = vpop.eup %2774  ;;  %v1074_v54 = vpop.xlane.xlu2 %1073 }
 0x447   : > { %2776 = vrcp.f32 %v1074_v54  ;;  %v3881_v54 = vpop.f32.mrf.mxu0 }
 0x44a   : > { %2450 = vmatmul.msk.bf16.gmra.mxu2 %vm508_vm1, %v3342_v48 }
 0x44c   : > { %1883 = vrot.lane.b32.xlu2 %v3106_v18, %s2978_s27 }
 0x44d   : > { %v3824_v8 = vpop.f32.mrf.mxu2  ;;  %v2777_v38 = vpop.eup %2776 }
 0x44e   : > { %4389 = vst [vmem:[#allocation8_spill] sm:$0xff] %v3824_v8 }
 0x454   : > { %1879 = vrot.lane.b32.xlu2 %v3070_v45, %s2978_s27 }
 0x455   : > { %v3828_v35 = vpop.f32.mrf.mxu2 }
 0x456   : > { %4390 = vst [vmem:[#allocation9_spill] sm:$0xff] %v3828_v35 }
 0x45a   : > { %2451 = vmatmul.msk.bf16.gmra.mxu2 %vm508_vm1, %v3383_v3 }
 0x45c   : > { %1877 = vrot.lane.b32.xlu2 %v3058_v27, %s2978_s27 }
 0x45d   : > { %v3835_v48 = vpop.f32.mrf.mxu2 }
 0x45e   : > { %4391 = vst [vmem:[#allocation10_spill] sm:$0xff] %v3835_v48 }
 0x465   : > { %v3837_v18 = vpop.f32.mrf.mxu2 }
 0x466   : > { %4392 = vst [vmem:[#allocation11_spill] sm:$0xff] %v3837_v18  ;;  %1085 = vadd.xlane.f32.xlu1 %v3839_v17 }
 0x46a   : > { %2452 = vmatmul.msk.bf16.gmra.mxu2 %vm508_vm1, %v3493_v51  ;;  %v1113_v51 = vmul.f32 %v2777_v38, %v3721_v28 }
 0x46d   : > { %v3844_v45 = vpop.f32.mrf.mxu2 }
 0x46e   : > { %4393 = vst [vmem:[#allocation12_spill] sm:$0xff] %v3844_v45 }
 0x475   : > { %v3846_v3 = vpop.f32.mrf.mxu2 }
 0x476   : > { %4394 = vst [vmem:[#allocation13_spill] sm:$0xff] %v3846_v3  ;;  %v1076_v30 = vpop.xlane.xlu1 %1075 }
 0x477   : > { %2778 = vrcp.f32 %v1076_v30  ;;  %v1754_v30 = vsub.f32 %v3672_v11, %v3748_v46  ;;  %v3895_v11 = vpop.f32.mrf.mxu0 }
 0x47d   : > { %v1308_v43 = vpop.f32.mrf.mxu2  ;;  %v2779_v21 = vpop.eup %2778 }
 0x47e   : > { %v3850_v7 = vadd.f32 %v1308_v43, %v1203_v20  ;;  %v1078_v12 = vpop.xlane.xlu2 %1077  ;;  %v1720_v57 = vpop.xlane.xlu1 %1719  ;;  %v1114_v1 = vmul.f32 %v2779_v21, %v3751_v55  ;;  %v1204_v21 = vld [vmem:[#allocation2 + $0x108] sm:$0xff] }
 0x47f   : > { %v1751_v63 = vsub.f32 %v3759_v60, %v1720_v57  ;;  %1506 = vrot.lane.b32.xlu1 %v3058_v27, %s2979_s28  ;;  %v1513_v20 = vpop.permute.xlu0 %1512 }
 0x480   : > { %1348 = vmax.xlane.f32.xlu0 %v3850_v7  ;;  %v1125_v5 = vpack.c.bf16 %v1114_v1, %v1113_v51  ;;  %v1773_v51 = vmul.f32 1.442695, %v1754_v30  ;;  %v1208_v30 = vld [vmem:[#allocation2 + $0x128] sm:$0xff] }
 0x481   : > { %v1767_v53 = vmul.f32 1.442695, %v1751_v63 }
 0x482   : > { %1181 = vmatmul.bf16.gmra.mxu0 %v1125_v5 }
 0x483   : > { %2780 = vpow2.f32 %v1767_v53  ;;  %v4395_v53 = vld [vmem:[#allocation5_spill] sm:$0xff] }
 0x484   : > { %2782 = vrcp.f32 %v1078_v12  ;;  %4396 = vst [vmem:[#allocation5_spill] sm:$0xff] %v3895_v11 }
 0x485   : > { %v1310_v29 = vpop.f32.mrf.mxu2 }
 0x486   : > { %v1080_v44 = vpop.xlane.xlu1 %1079  ;;  %v3890_v63 = vadd.f32 %v1310_v29, %v1204_v21  ;;  %v1205_v21 = vld [vmem:[#allocation2 + $0x110] sm:$0xff] }
 0x487   : > { %v1082_v28 = vpop.xlane.xlu2 %1081  ;;  %2784 = vrcp.f32 %v1080_v44  ;;  %v1752_v44 = vsub.f32 %v4395_v53, %v3741_v31  ;;  %v1207_v53 = vld [vmem:[#allocation2 + $0x120] sm:$0xff] }
 0x489   : > { %v3862_v55 = vpop.eup %2780 }
 0x48a   : > { %1799 = vadd.xlane.f32.xlu2 %v3862_v55  ;;  %v2783_v27 = vpop.eup %2782 }
 0x48b   : > { %v1115_v62 = vmul.f32 %v2783_v27, %v3765_v52 }
 0x48d   : > { %v3865_v60 = vpop.f32.mrf.mxu2  ;;  %v2785_v61 = vpop.eup %2784 }
 0x48e   : > { %v1724_v49 = vpop.xlane.xlu1 %1723  ;;  %v1116_v47 = vmul.f32 %v2785_v61, %v3773_v16  ;;  %v1511_v61 = vpop.permute.xlu0 %1510 }
 0x48f   : > { %v3871_v14 = vpop.xlane.xlu2 %1729  ;;  %v1753_v36 = vsub.f32 %v3784_v58, %v1724_v49 }
 0x490   : > { %v1126_v0 = vpack.c.bf16 %v1116_v47, %v1115_v62 }
 0x491   : > { %v1771_v26 = vmul.f32 1.442695, %v1753_v36  ;;  %v3908_v36 = vpop.f32.mrf.mxu0 }
 0x492   : > { %1737 = vmax.xlane.f32.xlu2 %v3874_v9  ;;  %1186 = vmatmul.bf16.gmra.mxu0 %v1126_v0 }
 0x493   : > { %2786 = vpow2.f32 %v1771_v26 }
 0x494   : > { %1500 = vrot.lane.b32.xlu0 %v3092_v2, %s2979_s28  ;;  %2788 = vrcp.f32 %v1082_v28  ;;  %v1580_v28 = vld [vmem:[#allocation2 + $0x1b0] sm:$0xff] }
 0x495   : > { %v1315_v52 = vpop.f32.mrf.mxu2  ;;  %v3898_v29 = vadd.f32 %v3730_v6, %v1580_v28  ;;  %v1206_v6 = vld [vmem:[#allocation2 + $0x118] sm:$0xff]  ;;  %v1212_v28 = vld [vmem:[#allocation2 + $0x148] sm:$0xff] }
 0x496   : > { %v1084_v16 = vpop.xlane.xlu1 %1083 }
 0x497   : > { %v699_v19 = vpop.xlane.xlu2 %698  ;;  %2790 = vrcp.f32 %v1084_v16 }
 0x498   : > { %2792 = vrcp.f32 %v699_v19 }
 0x499   : > { %v3879_v23 = vpop.eup %2786 }
 0x49a   : > { %1803 = vadd.xlane.f32.xlu2 %v3879_v23  ;;  %v2789_v58 = vpop.eup %2788 }
 0x49b   : > { %v1117_v12 = vmul.f32 %v2789_v58, %v3775_v25  ;;  %v3916_v58 = vpop.f32.mrf.mxu0 }
 0x49d   : > { %v3886_v38 = vpop.f32.mrf.mxu2  ;;  %v2791_v43 = vpop.eup %2790 }
 0x49e   : > { %v1118_v57 = vmul.f32 %v2791_v43, %v3796_v40  ;;  %v2793_v46 = vpop.eup %2792  ;;  %v1769_v40 = vmul.f32 1.442695, %v1752_v44 }
 0x49f   : > { %v701_v1 = vpop.xlane.xlu2 %700  ;;  %v740_v10 = vmul.f32 %v2793_v46, %v3798_v22  ;;  %v1882_v22 = vpop.permute.xlu0 %1881  ;;  %v3931_v46 = vadd.f32 %v3886_v38, %v1207_v53 }
 0x4a0   : > { %2794 = vrcp.f32 %v701_v1  ;;  %v1127_v5 = vpack.c.bf16 %v1118_v57, %v1117_v12 }
 0x4a1   : > { %2796 = vpow2.f32 %v1773_v51 }
 0x4a2   : > { %1350 = vmax.xlane.f32.xlu2 %v3890_v63  ;;  %1191 = vmatmul.bf16.gmra.mxu0 %v1127_v5  ;;  %2798 = vpow2.f32 %v1769_v40 }
 0x4a3   : > { %v3925_v1 = vpop.f32.mrf.mxu0 }
 0x4a5   : > { %v1320_v25 = vpop.f32.mrf.mxu2 }
 0x4a6   : > { %v2795_v27 = vpop.eup %2794  ;;  %v3918_v12 = vadd.f32 %v1320_v25, %v1208_v30 }
 0x4a7   : > { %v3900_v56 = vpop.xlane.xlu2 %1087  ;;  %v741_v31 = vmul.f32 %v2795_v27, %v3806_v59  ;;  %v3904_v49 = vpop.eup %2796  ;;  %v3912_v59 = vadd.f32 %v1315_v52, %v1206_v6  ;;  %v3922_v52 = vadd.f32 %v3865_v60, %v1205_v21  ;;  %v1209_v27 = vld [vmem:[#allocation2 + $0x130] sm:$0xff]  ;;  %v1211_v6 = vld [vmem:[#allocation2 + $0x140] sm:$0xff] }
 0x4a8   : > { %v3910_v16 = vpop.eup %2798  ;;  %v1509_v57 = vpop.permute.xlu0 %1508  ;;  %2800 = vrcp.f32 %v3900_v56 }
 0x4a9   : > { %1731 = vmax.xlane.f32.xlu1 %v3898_v29  ;;  %v753_v62 = vpack.c.bf16 %v741_v31, %v740_v10  ;;  %v1584_v10 = vld [vmem:[#allocation2 + $0x1d0] sm:$0xff]  ;;  %v1704_v31 = vpop.f32.mrf.mxu3 }
 0x4aa   : > { %1805 = vadd.xlane.f32.xlu2 %v3904_v49 }
 0x4ab   : > { %805 = vmatmul.bf16.vlgmr.msrb.gmra.mxu1 %v753_v62  ;;  %v3934_v25 = vpop.f32.mrf.mxu0  ;;  %v3946_v62 = vadd.f32 %v1704_v31, %v1584_v10  ;;  %v1582_v10 = vld [vmem:[#allocation2 + $0x1c0] sm:$0xff] }
 0x4ad   : > { %v1323_v47 = vpop.f32.mrf.mxu2 }
 0x4ae   : > { %v1515_v0 = vpop.permute.xlu1 %1514 }
 0x4af   : > { %v1884_v26 = vpop.permute.xlu2 %1883  ;;  %1524 = vmatpush.bf16.msra.mxu1 %v1515_v0 }
 0x4b0   : > { %1896 = vmatpush.bf16.msrb.mxu0 %v1884_v26  ;;  %v3944_v38 = vpop.xlane.xlu0 %1733 }
 0x4b1   : > { %1801 = vadd.xlane.f32.xlu1 %v3910_v16 }
 0x4b2   : > { %1354 = vmax.xlane.f32.xlu2 %v3912_v59 }
 0x4b3   : > { %1525 = vmatpush.bf16.msra.mxu1 %v1513_v20  ;;  %v1210_v20 = vld [vmem:[#allocation2 + $0x138] sm:$0xff]  ;;  %v3948_v0 = vpop.f32.mrf.mxu0 }
 0x4b4   : > { %1897 = vmatpush.bf16.msrb.mxu0 %v1882_v22 }
 0x4b5   : > { %v1325_v19 = vpop.f32.mrf.mxu2 }
 0x4b6   : > { %v3927_v44 = vadd.f32 %v1325_v19, %v1210_v20  ;;  %v2801_v19 = vpop.eup %2800 }
 0x4b7   : > { %v1880_v43 = vpop.permute.xlu2 %1879  ;;  %1526 = vmatpush.bf16.msra.mxu1 %v1511_v61  ;;  %v3941_v61 = vadd.f32 %v1323_v47, %v1209_v27 }
 0x4b8   : > { %1898 = vmatpush.bf16.msrb.mxu0 %v1880_v43  ;;  %v1505_v47 = vpop.permute.xlu0 %1504 }
 0x4ba   : > { %1358 = vmax.xlane.f32.xlu2 %v3918_v12 }
 0x4bb   : > { %1527 = vmatpush.bf16.msra.mxu1 %v1509_v57  ;;  %v3957_v26 = vpop.f32.mrf.mxu0 }
 0x4bd   : > { %v1328_v51 = vpop.f32.mrf.mxu2 }
 0x4be   : > { %1352 = vmax.xlane.f32.xlu0 %v3922_v52 }
 0x4bf   : > { %v1878_v5 = vpop.permute.xlu2 %1877 }
 0x4c0   : > { %1899 = vmatpush.bf16.msrb.mxu0 %v1878_v5  ;;  %v1503_v43 = vpop.permute.xlu0 %1502 }
 0x4c2   : > { %1362 = vmax.xlane.f32.xlu2 %v3927_v44 }
 0x4c3   : > { %v3961_v57 = vpop.f32.mrf.mxu0 }
 0x4c5   : > { %v1330_v60 = vpop.f32.mrf.mxu2 }
 0x4c6   : > { %1356 = vmax.xlane.f32.xlu0 %v3931_v46  ;;  %v3936_v40 = vadd.f32 %v1330_v60, %v1212_v28 }
 0x4c8   : > { %v3963_v20 = vpop.permute.xlu0 %1873 }
 0x4ca   : > { %1875 = vrot.lane.b32.xlu1 %v3063_v33, %s2978_s27  ;;  %1366 = vmax.xlane.f32.xlu2 %v3936_v40  ;;  %v3953_v33 = vadd.f32 %v1328_v51, %v1211_v6  ;;  %v1756_v6 = vsub.f32 %v3789_v32, %v3871_v14 }
 0x4cb   : > { %v3965_v5 = vpop.f32.mrf.mxu0 }
 0x4cd   : > { %v1333_v60 = vpop.f32.mrf.mxu2 }
 0x4ce   : > { %1360 = vmax.xlane.f32.xlu0 %v3941_v61 }
 0x4d2   : > { %1871 = vrot.lane.b32.xlu1 %v3092_v2, %s2978_s27  ;;  %1739 = vmax.xlane.f32.xlu2 %v3946_v62  ;;  %v1120_v2 = vmul.f32 %v2801_v19, %v3809_v42  ;;  %v3971_v42 = vadd.f32 %v3858_v50, %v1582_v10 }
 0x4d6   : > { %1364 = vmax.xlane.f32.xlu0 %v3953_v33 }
 0x4d9   : > { %v1086_v22 = vpop.xlane.xlu1 %1085 }
 0x4da   : > { %2802 = vrcp.f32 %v1086_v22 }
 0x4e0   : > { %v2803_v30 = vpop.eup %2802 }
 0x4e1   : > { %v1119_v21 = vmul.f32 %v2803_v30, %v3839_v17  ;;  %v3968_v17 = vpop.f32.mrf.mxu0  ;;  %v1777_v30 = vmul.f32 1.442695, %v1756_v6  ;;  %v1706_v6 = vpop.f32.mrf.mxu3 }
 0x4e3   : > { %v1128_v51 = vpack.c.bf16 %v1120_v2, %v1119_v21 }
 0x4e5   : > { %1196 = vmatmul.bf16.gmra.mxu0 %v1128_v51 }
 0x4f1   : > { %v1507_v56 = vpop.permute.xlu1 %1506 }
 0x4f2   : > { %1528 = vmatpush.bf16.msra.mxu1 %v1507_v56 }
 0x4f3   : > { %v1349_v53 = vpop.xlane.xlu0 %1348 }
 0x4f4   : > { %v1380_v28 = vsub.f32 %v3850_v7, %v1349_v53  ;;  %v1214_v7 = vld [vmem:[#allocation2 + $0x158] sm:$0xff] }
 0x4f6   : > { %v1396_v27 = vmul.f32 1.442695, %v1380_v28  ;;  %1529 = vmatpush.bf16.msra.mxu1 %v1505_v47  ;;  %v1335_v47 = vpop.f32.mrf.mxu2 }
 0x4f7   : > { %v3981_v21 = vadd.f32 %v1335_v47, %v1214_v7 }
 0x4f8   : > { %2804 = vpow2.f32 %v1396_v27 }
 0x4f9   : > { %2806 = vpow2.f32 %v1777_v30  ;;  %v1213_v30 = vld [vmem:[#allocation2 + $0x150] sm:$0xff] }
 0x4fa   : > { %1530 = vmatpush.bf16.msra.mxu1 %v1503_v43  ;;  %v4009_v32 = vadd.f32 %v1333_v60, %v1213_v30 }
 0x4fc   : > { %1735 = vmax.xlane.f32.xlu1 %v3971_v42 }
 0x4fd   : > { %v1800_v22 = vpop.xlane.xlu2 %1799 }
 0x4fe   : > { %v3974_v31 = vpop.eup %2804 }
 0x4ff   : > { %1428 = vadd.xlane.f32.xlu0 %v3974_v31  ;;  %v3979_v19 = vpop.f32.mrf.mxu0  ;;  %v3990_v14 = vpop.eup %2806 }
 0x504   : > { %1370 = vmax.xlane.f32.xlu1 %v3981_v21 }
 0x505   : > { %v3984_v50 = vpop.xlane.xlu2 %1737 }
 0x506   : > { %v1501_v43 = vpop.permute.xlu0 %1500 }
 0x507   : > { %1531 = vmatpush.bf16.msra.mxu1 %v1501_v43  ;;  %v3986_v2 = vpop.f32.mrf.mxu0 }
 0x50c   : > { %1809 = vadd.xlane.f32.xlu1 %v3990_v14 }
 0x50d   : > { %v3993_v51 = vpop.xlane.xlu2 %1803 }
 0x50f   : > { %v3995_v56 = vpop.f32.mrf.mxu0 }
 0x515   : > { %v1351_v53 = vpop.xlane.xlu2 %1350 }
 0x516   : > { %v1381_v28 = vsub.f32 %v3890_v63, %v1351_v53  ;;  %v1755_v53 = vsub.f32 %v3681_v39, %v3761_v37  ;;  %v1338_v63 = vpop.f32.mrf.mxu2 }
 0x517   : > { %v3998_v27 = vpop.f32.mrf.mxu0 }
 0x518   : > { %v1398_v10 = vmul.f32 1.442695, %v1381_v28  ;;  %v1775_v3 = vmul.f32 1.442695, %v1755_v53 }
 0x51a   : > { %2808 = vpow2.f32 %v1398_v10  ;;  %v1585_v10 = vld [vmem:[#allocation2 + $0x1d8] sm:$0xff] }
 0x51b   : > { %v4020_v18 = vadd.f32 %v1706_v6, %v1585_v10  ;;  %2810 = vpow2.f32 %v1775_v3 }
 0x51c   : > { %v4018_v28 = vpop.xlane.xlu1 %1731 }
 0x51d   : > { %v4007_v43 = vpop.xlane.xlu2 %1805 }
 0x51f   : > { %v4002_v7 = vpop.f32.mrf.mxu0 }
 0x520   : > { %v4004_v47 = vpop.eup %2808 }
 0x521   : > { %1430 = vadd.xlane.f32.xlu0 %v4004_v47  ;;  %v4025_v39 = vpop.eup %2810 }
 0x524   : > { %v1802_v35 = vpop.xlane.xlu1 %1801 }
 0x525   : > { %v1355_v48 = vpop.xlane.xlu2 %1354 }
 0x526   : > { %v1383_v4 = vsub.f32 %v3912_v59, %v1355_v48  ;;  %v1340_v48 = vpop.f32.mrf.mxu2 }
 0x527   : > { %v4011_v45 = vpop.f32.mrf.mxu0 }
 0x528   : > { %v1402_v37 = vmul.f32 1.442695, %v1383_v4 }
 0x529   : > { %1368 = vmax.xlane.f32.xlu0 %v4009_v32 }
 0x52d   : > { %v1359_v13 = vpop.xlane.xlu2 %1358 }
 0x531   : > { %v1353_v60 = vpop.xlane.xlu0 %1352  ;;  %1741 = vmax.xlane.f32.xlu0 %v4020_v18 }
 0x532   : > { %v1382_v30 = vsub.f32 %v3922_v52, %v1353_v60  ;;  %v1758_v52 = vsub.f32 %v3736_v15, %v3944_v38  ;;  %v1216_v60 = vld [vmem:[#allocation2 + $0x168] sm:$0xff] }
 0x533   : > { %v4034_v59 = vadd.f32 %v1340_v48, %v1216_v60 }
 0x534   : > { %v1400_v8 = vmul.f32 1.442695, %v1382_v30  ;;  %v1781_v4 = vmul.f32 1.442695, %v1758_v52 }
 0x536   : > { %2812 = vpow2.f32 %v1400_v8 }
 0x537   : > { %2814 = vrcp.f32 %v1802_v35 }
 0x538   : > { %2816 = vrcp.f32 %v1800_v22  ;;  %v1363_v22 = vpop.xlane.xlu2 %1362 }
 0x539   : > { %v1357_v53 = vpop.xlane.xlu0 %1356  ;;  %1807 = vadd.xlane.f32.xlu0 %v4025_v39  ;;  %2818 = vpow2.f32 %v1402_v37 }
 0x53a   : > { %v1384_v6 = vsub.f32 %v3931_v46, %v1357_v53  ;;  %v1709_v46 = vpop.f32.mrf.mxu3 }
 0x53c   : > { %v4031_v3 = vpop.eup %2812  ;;  %v1404_v10 = vmul.f32 1.442695, %v1384_v6  ;;  %v1876_v8 = vpop.permute.xlu1 %1875 }
 0x53d   : > { %1432 = vadd.xlane.f32.xlu2 %v4031_v3  ;;  %1900 = vmatpush.bf16.msrb.mxu0 %v1876_v8  ;;  %v2815_v35 = vpop.eup %2814 }
 0x53e   : > { %2820 = vpow2.f32 %v1404_v10  ;;  %v2817_v53 = vpop.eup %2816  ;;  %v1848_v38 = vmul.f32 %v2815_v35, %v3910_v16  ;;  %v1385_v10 = vsub.f32 %v3918_v12, %v1359_v13  ;;  %v1586_v16 = vld [vmem:[#allocation2 + $0x1e0] sm:$0xff] }
 0x53f   : > { %v4038_v15 = vpop.eup %2818  ;;  %2822 = vpow2.f32 %v1781_v4  ;;  %v1847_v52 = vmul.f32 %v2817_v53, %v3862_v55  ;;  %v1215_v4 = vld [vmem:[#allocation2 + $0x160] sm:$0xff]  ;;  %v4053_v13 = vadd.f32 %v1709_v46, %v1586_v16 }
 0x540   : > { %2824 = vrcp.f32 %v4007_v43  ;;  %v1367_v53 = vpop.xlane.xlu2 %1366 }
 0x541   : > { %v1361_v30 = vpop.xlane.xlu0 %1360  ;;  %1374 = vmax.xlane.f32.xlu0 %v4034_v59  ;;  %1901 = vmatpush.bf16.msrb.mxu0 %v3963_v20  ;;  %v1387_v20 = vsub.f32 %v3927_v44, %v1363_v22  ;;  %v1863_v48 = vpack.c.bf16 %v1848_v38, %v1847_v52 }
 0x542   : > { %v1386_v37 = vsub.f32 %v3941_v61, %v1361_v30  ;;  %v1406_v61 = vmul.f32 1.442695, %v1385_v10  ;;  %v1711_v12 = vpop.f32.mrf.mxu3  ;;  %v4055_v30 = vadd.f32 %v1338_v63, %v1215_v4  ;;  %v1389_v63 = vsub.f32 %v3936_v40, %v1367_v53  ;;  %v1217_v40 = vld [vmem:[#allocation2 + $0x170] sm:$0xff] }
 0x543   : > { %v1410_v55 = vmul.f32 1.442695, %v1387_v20 }
 0x544   : > { %v4042_v6 = vpop.eup %2820  ;;  %v1872_v60 = vpop.permute.xlu1 %1871  ;;  %v1408_v8 = vmul.f32 1.442695, %v1386_v37  ;;  %v1588_v37 = vld [vmem:[#allocation2 + $0x1f0] sm:$0xff]  ;;  %v1414_v20 = vmul.f32 1.442695, %v1389_v63 }
 0x545   : > { %1436 = vadd.xlane.f32.xlu1 %v4042_v6  ;;  %1434 = vadd.xlane.f32.xlu2 %v4038_v15  ;;  %v4049_v35 = vpop.eup %2822 }
 0x546   : > { %1902 = vmatpush.bf16.msrb.mxu0 %v1872_v60  ;;  %2826 = vpow2.f32 %v1408_v8  ;;  %v2825_v44 = vpop.eup %2824  ;;  %v1757_v60 = vsub.f32 %v3898_v29, %v4018_v28  ;;  %v1587_v8 = vld [vmem:[#allocation2 + $0x1e8] sm:$0xff] }
 0x547   : > { %2828 = vrcp.f32 %v3993_v51  ;;  %v1850_v22 = vmul.f32 %v2825_v44, %v3904_v49  ;;  %v1343_v49 = vpop.f32.mrf.mxu2 }
 0x548   : > { %2830 = vpow2.f32 %v1406_v61  ;;  %v1779_v4 = vmul.f32 1.442695, %v1757_v60  ;;  %v4077_v61 = vadd.f32 %v1711_v12, %v1587_v8 }
 0x549   : > { %1903 = vmatmul.bf16.vlgmr.msrb.gmra.mxu0 %v1863_v48  ;;  %1813 = vadd.xlane.f32.xlu0 %v4049_v35  ;;  %2832 = vpow2.f32 %v1410_v55  ;;  %v4079_v55 = vadd.f32 %v1343_v49, %v1217_v40  ;;  %v1365_v53 = vpop.xlane.xlu0 %1364  ;;  %v1740_v49 = vpop.xlane.xlu2 %1739 }
 0x54a   : > { %v1714_v52 = vpop.f32.mrf.mxu3  ;;  %2834 = vpow2.f32 %v1414_v20  ;;  %v1388_v63 = vsub.f32 %v3953_v33, %v1365_v53 }
 0x54b   : > { %v4074_v16 = vadd.f32 %v1714_v52, %v1588_v37  ;;  %2836 = vpow2.f32 %v1779_v4 }
 0x54c   : > { %v4060_v43 = vpop.eup %2826  ;;  %v1412_v52 = vmul.f32 1.442695, %v1388_v63 }
 0x54d   : > { %1743 = vmax.xlane.f32.xlu1 %v4053_v13  ;;  %1372 = vmax.xlane.f32.xlu2 %v4055_v30  ;;  %v2829_v38 = vpop.eup %2828 }
 0x54e   : > { %v4063_v46 = vpop.eup %2830  ;;  %v1849_v10 = vmul.f32 %v2829_v38, %v3879_v23  ;;  %v1589_v23 = vld [vmem:[#allocation2 + $0x1f8] sm:$0xff]  ;;  %2838 = vpow2.f32 %v1412_v52 }
 0x54f   : > { %v4067_v51 = vpop.eup %2832  ;;  %v1345_v37 = vpop.f32.mrf.mxu2 }
 0x550   : > { %v1864_v48 = vpack.c.bf16 %v1850_v22, %v1849_v10  ;;  %v4083_v28 = vpop.eup %2834  ;;  %v1218_v22 = vld [vmem:[#allocation2 + $0x178] sm:$0xff] }
 0x551   : > { %1440 = vadd.xlane.f32.xlu0 %v4060_v43  ;;  %v4090_v12 = vpop.eup %2836  ;;  %v4095_v10 = vadd.f32 %v1345_v37, %v1218_v22 }
 0x552   : > { %v1716_v29 = vpop.f32.mrf.mxu3 }
 0x553   : > { %v4086_v44 = vadd.f32 %v1716_v29, %v1589_v23  ;;  %v1761_v29 = vsub.f32 %v3946_v62, %v1740_v49 }
 0x554   : > { %v4105_v23 = vpop.eup %2838 }
 0x555   : > { %1438 = vadd.xlane.f32.xlu2 %v4063_v46  ;;  %1442 = vadd.xlane.f32.xlu1 %v4067_v51  ;;  %v1787_v22 = vmul.f32 1.442695, %v1761_v29 }
 0x559   : > { %1908 = vmatmul.bf16.gmra.mxu0 %v1864_v48  ;;  %1747 = vmax.xlane.f32.xlu0 %v4074_v16  ;;  %v1760_v48 = vsub.f32 %v3874_v9, %v3984_v50 }
 0x55b   : > { %v1785_v33 = vmul.f32 1.442695, %v1760_v48 }
 0x55d   : > { %1745 = vmax.xlane.f32.xlu2 %v4077_v61  ;;  %1376 = vmax.xlane.f32.xlu1 %v4079_v55 }
 0x561   : > { %1446 = vadd.xlane.f32.xlu0 %v4083_v28 }
 0x562   : > { %v4088_v38 = vpop.f32.mrf.mxu0 }
 0x565   : > { %1749 = vmax.xlane.f32.xlu1 %v4086_v44  ;;  %1811 = vadd.xlane.f32.xlu2 %v4090_v12 }
 0x56a   : > { %v4097_v60 = vpop.f32.mrf.mxu0 }
 0x56d   : > { %1378 = vmax.xlane.f32.xlu2 %v4095_v10 }
 0x56f   : > { %v1736_v8 = vpop.xlane.xlu1 %1735 }
 0x570   : > { %v1759_v40 = vsub.f32 %v3971_v42, %v1736_v8 }
 0x572   : > { %v1783_v4 = vmul.f32 1.442695, %v1759_v40  ;;  %v1429_v62 = vpop.xlane.xlu0 %1428 }
 0x574   : > { %2840 = vpow2.f32 %v1783_v4 }
 0x575   : > { %1444 = vadd.xlane.f32.xlu2 %v4105_v23  ;;  %2842 = vpow2.f32 %v1785_v33 }
 0x577   : > { %v1371_v53 = vpop.xlane.xlu1 %1370 }
 0x578   : > { %v1391_v63 = vsub.f32 %v3981_v21, %v1371_v53 }
 0x57a   : > { %v4110_v9 = vpop.eup %2840  ;;  %v1418_v50 = vmul.f32 1.442695, %v1391_v63 }
 0x57b   : > { %v4112_v37 = vpop.eup %2842  ;;  %1815 = vadd.xlane.f32.xlu1 %v4110_v9 }
 0x57c   : > { %2844 = vpow2.f32 %v1418_v50 }
 0x57d   : > { %1817 = vadd.xlane.f32.xlu2 %v4112_v37  ;;  %2846 = vpow2.f32 %v1787_v22 }
 0x57e   : > { %2848 = vrcp.f32 %v1429_v62 }
 0x582   : > { %v4116_v42 = vpop.eup %2844 }
 0x583   : > { %v4118_v52 = vpop.eup %2846  ;;  %1450 = vadd.xlane.f32.xlu1 %v4116_v42 }
 0x584   : > { %v2849_v48 = vpop.eup %2848 }
 0x585   : > { %1819 = vadd.xlane.f32.xlu2 %v4118_v52  ;;  %v1476_v40 = vmul.f32 %v2849_v48, %v3974_v31 }
 0x594   : > { %v1431_v21 = vpop.xlane.xlu0 %1430 }
 0x595   : > { %2850 = vrcp.f32 %v1431_v21  ;;  %v1810_v21 = vpop.xlane.xlu1 %1809 }
 0x59b   : > { %v2851_v8 = vpop.eup %2850 }
 0x59c   : > { %v1477_v33 = vmul.f32 %v2851_v8, %v4004_v47  ;;  %v1369_v49 = vpop.xlane.xlu0 %1368 }
 0x59d   : > { %v1390_v4 = vsub.f32 %v4009_v32, %v1369_v49 }
 0x59e   : > { %v1492_v29 = vpack.c.bf16 %v1477_v33, %v1476_v40 }
 0x59f   : > { %v1416_v53 = vmul.f32 1.442695, %v1390_v4 }
 0x5a0   : > { %1532 = vmatmul.bf16.vlgmr.msra.gmra.mxu1 %v1492_v29 }
 0x5a1   : > { %2852 = vpow2.f32 %v1416_v53 }
 0x5a4   : > { %v1742_v63 = vpop.xlane.xlu0 %1741 }
 0x5a5   : > { %v1762_v22 = vsub.f32 %v4020_v18, %v1742_v63 }
 0x5a7   : > { %v4126_v50 = vpop.eup %2852  ;;  %v1789_v62 = vmul.f32 1.442695, %v1762_v22 }
 0x5a8   : > { %1448 = vadd.xlane.f32.xlu0 %v4126_v50 }
 0x5a9   : > { %2854 = vpow2.f32 %v1789_v62 }
 0x5aa   : > { %2856 = vrcp.f32 %v1810_v21 }
 0x5ac   : > { %v1808_v31 = vpop.xlane.xlu0 %1807 }
 0x5ad   : > { %2858 = vrcp.f32 %v1808_v31 }
 0x5af   : > { %v4129_v47 = vpop.eup %2854 }
 0x5b0   : > { %v1433_v32 = vpop.xlane.xlu2 %1432  ;;  %1821 = vadd.xlane.f32.xlu0 %v4129_v47  ;;  %v2857_v48 = vpop.eup %2856 }
 0x5b1   : > { %v1852_v33 = vmul.f32 %v2857_v48, %v3990_v14  ;;  %2860 = vrcp.f32 %v1433_v32 }
 0x5b3   : > { %v2859_v8 = vpop.eup %2858 }
 0x5b4   : > { %v1375_v40 = vpop.xlane.xlu0 %1374  ;;  %v1851_v18 = vmul.f32 %v2859_v8, %v4025_v39 }
 0x5b5   : > { %v1393_v49 = vsub.f32 %v4034_v59, %v1375_v40 }
 0x5b6   : > { %v1865_v4 = vpack.c.bf16 %v1852_v33, %v1851_v18 }
 0x5b7   : > { %v1422_v29 = vmul.f32 1.442695, %v1393_v49  ;;  %v2861_v22 = vpop.eup %2860 }
 0x5b8   : > { %v1435_v53 = vpop.xlane.xlu2 %1434  ;;  %v1437_v63 = vpop.xlane.xlu1 %1436  ;;  %1913 = vmatmul.bf16.gmra.mxu0 %v1865_v4  ;;  %v1478_v39 = vmul.f32 %v2861_v22, %v4031_v3 }
 0x5b9   : > { %2862 = vrcp.f32 %v1435_v53 }
 0x5ba   : > { %2864 = vpow2.f32 %v1422_v29 }
 0x5bc   : > { %v1814_v62 = vpop.xlane.xlu0 %1813 }
 0x5bf   : > { %v2863_v21 = vpop.eup %2862 }
 0x5c0   : > { %v4135_v31 = vpop.eup %2864  ;;  %v1373_v20 = vpop.xlane.xlu2 %1372  ;;  %v1479_v14 = vmul.f32 %v2863_v21, %v4038_v15 }
 0x5c1   : > { %v1744_v11 = vpop.xlane.xlu1 %1743  ;;  %v1392_v59 = vsub.f32 %v4055_v30, %v1373_v20  ;;  %1454 = vadd.xlane.f32.xlu2 %v4135_v31 }
 0x5c2   : > { %v1763_v32 = vsub.f32 %v4053_v13, %v1744_v11  ;;  %v1493_v48 = vpack.c.bf16 %v1479_v14, %v1478_v39 }
 0x5c3   : > { %v1420_v8 = vmul.f32 1.442695, %v1392_v59 }
 0x5c4   : > { %v1791_v40 = vmul.f32 1.442695, %v1763_v32  ;;  %1537 = vmatmul.bf16.gmra.mxu1 %v1493_v48  ;;  %v1441_v18 = vpop.xlane.xlu0 %1440 }
 0x5c5   : > { %2866 = vpow2.f32 %v1420_v8 }
 0x5c6   : > { %2868 = vpow2.f32 %v1791_v40 }
 0x5c7   : > { %2870 = vrcp.f32 %v1437_v63 }
 0x5c8   : > { %v1439_v33 = vpop.xlane.xlu2 %1438 }
 0x5c9   : > { %v1443_v49 = vpop.xlane.xlu1 %1442  ;;  %2872 = vrcp.f32 %v1439_v33 }
 0x5ca   : > { %2874 = vrcp.f32 %v1814_v62 }
 0x5cb   : > { %v4142_v3 = vpop.eup %2866  ;;  %2876 = vrcp.f32 %v1443_v49 }
 0x5cc   : > { %v4144_v15 = vpop.eup %2868  ;;  %1452 = vadd.xlane.f32.xlu1 %v4142_v3  ;;  %v1748_v53 = vpop.xlane.xlu0 %1747 }
 0x5cd   : > { %v2871_v30 = vpop.eup %2870  ;;  %1823 = vadd.xlane.f32.xlu0 %v4144_v15  ;;  %v1765_v59 = vsub.f32 %v4074_v16, %v1748_v53 }
 0x5ce   : > { %v1480_v4 = vmul.f32 %v2871_v30, %v4042_v6 }
 0x5cf   : > { %v2873_v11 = vpop.eup %2872  ;;  %v1795_v32 = vmul.f32 1.442695, %v1765_v59 }
 0x5d0   : > { %v1746_v13 = vpop.xlane.xlu2 %1745  ;;  %v1481_v29 = vmul.f32 %v2873_v11, %v4063_v46  ;;  %v2875_v46 = vpop.eup %2874 }
 0x5d1   : > { %v1377_v20 = vpop.xlane.xlu1 %1376  ;;  %v1764_v63 = vsub.f32 %v4077_v61, %v1746_v13  ;;  %v2877_v8 = vpop.eup %2876  ;;  %v1854_v11 = vmul.f32 %v2875_v46, %v4049_v35 }
 0x5d2   : > { %v1394_v22 = vsub.f32 %v4079_v55, %v1377_v20  ;;  %v1494_v21 = vpack.c.bf16 %v1481_v29, %v1480_v4 }
 0x5d3   : > { %v1793_v39 = vmul.f32 1.442695, %v1764_v63 }
 0x5d4   : > { %v1424_v14 = vmul.f32 1.442695, %v1394_v22  ;;  %1542 = vmatmul.bf16.gmra.mxu1 %v1494_v21  ;;  %v1447_v22 = vpop.xlane.xlu0 %1446 }
 0x5d5   : > { %2878 = vpow2.f32 %v1793_v39 }
 0x5d6   : > { %2880 = vpow2.f32 %v1424_v14 }
 0x5d7   : > { %2882 = vrcp.f32 %v1441_v18  ;;  %v1483_v18 = vmul.f32 %v2877_v8, %v4067_v51 }
 0x5d8   : > { %v1812_v6 = vpop.xlane.xlu2 %1811 }
 0x5d9   : > { %v1750_v48 = vpop.xlane.xlu1 %1749  ;;  %2884 = vrcp.f32 %v1812_v6 }
 0x5da   : > { %v1766_v61 = vsub.f32 %v4086_v44, %v1750_v48  ;;  %2886 = vpow2.f32 %v1795_v32 }
 0x5db   : > { %v4154_v55 = vpop.eup %2878 }
 0x5dc   : > { %v1797_v62 = vmul.f32 1.442695, %v1766_v61  ;;  %v4156_v40 = vpop.eup %2880  ;;  %1825 = vadd.xlane.f32.xlu1 %v4154_v55 }
 0x5dd   : > { %v2883_v16 = vpop.eup %2882  ;;  %1456 = vadd.xlane.f32.xlu2 %v4156_v40 }
 0x5de   : > { %2888 = vpow2.f32 %v1797_v62  ;;  %v1482_v30 = vmul.f32 %v2883_v16, %v4060_v43 }
 0x5df   : > { %v2885_v33 = vpop.eup %2884 }
 0x5e0   : > { %v1379_v49 = vpop.xlane.xlu2 %1378  ;;  %v1853_v44 = vmul.f32 %v2885_v33, %v4090_v12  ;;  %v4165_v20 = vpop.eup %2886  ;;  %v1495_v4 = vpack.c.bf16 %v1483_v18, %v1482_v30 }
 0x5e1   : > { %v1395_v13 = vsub.f32 %v4095_v10, %v1379_v49  ;;  %v1904_v12 = vpop.f32.mrf.mxu0  ;;  %v4190_v18 = vpop.f32.mrf.mxu1 }
 0x5e2   : > { %v1866_v29 = vpack.c.bf16 %v1854_v11, %v1853_v44  ;;  %v4399_v44 = vpack.i.bf16 %v4011_v45, %v4002_v7 }
 0x5e3   : > { %v1426_v63 = vmul.f32 1.442695, %v1395_v13 }
 0x5e4   : > { %v4167_v53 = vpop.eup %2888  ;;  %1827 = vadd.xlane.f32.xlu1 %v4165_v20  ;;  %1547 = vmatmul.bf16.gmra.mxu1 %v1495_v4 }
 0x5e5   : > { %2890 = vpow2.f32 %v1426_v63  ;;  %1918 = vmatmul.bf16.gmra.mxu0 %v1866_v29  ;;  %1829 = vadd.xlane.f32.xlu2 %v4167_v53  ;;  %v4400_v63 = vpack.i.bf16 %v4097_v60, %v4088_v38 }
 0x5e6   : > { %2892 = vrcp.f32 %v1447_v22 }
 0x5e8   : > { %v1445_v43 = vpop.xlane.xlu2 %1444 }
 0x5e9   : > { %2894 = vrcp.f32 %v1445_v43  ;;  %v1906_v46 = vpop.f32.mrf.mxu0 }
 0x5ea   : > { %v2556_v16 = vpack.i.bf16 %v1906_v46, %v1904_v12 }
 0x5eb   : > { %v4171_v35 = vpop.eup %2890 }
 0x5ec   : > { %1458 = vadd.xlane.f32.xlu0 %v4171_v35  ;;  %v2893_v51 = vpop.eup %2892 }
 0x5ed   : > { %v1485_v59 = vmul.f32 %v2893_v51, %v4083_v28  ;;  %v2576_v28 = vpack.i.bf16 %v3961_v57, %v3957_v26 }
 0x5ee   : > { %v1816_v21 = vpop.xlane.xlu1 %1815 }
 0x5ef   : > { %v2895_v10 = vpop.eup %2894  ;;  %2896 = vrcp.f32 %v1816_v21 }
 0x5f0   : > { %v1818_v39 = vpop.xlane.xlu2 %1817  ;;  %v1484_v14 = vmul.f32 %v2895_v10, %v4105_v23  ;;  %v2546_v23 = vpack.i.bf16 %v3925_v1, %v3916_v58  ;;  %v4397_v58 = vpack.i.bf16 %v3986_v2, %v3979_v19  ;;  %v4197_v1 = vpop.f32.mrf.mxu1 }
 0x5f1   : > { %2898 = vrcp.f32 %v1818_v39  ;;  %v1909_v33 = vpop.f32.mrf.mxu0 }
 0x5f2   : > { %v1496_v32 = vpack.c.bf16 %v1485_v59, %v1484_v14 }
 0x5f4   : > { %1552 = vmatmul.bf16.gmra.mxu1 %v1496_v32 }
 0x5f5   : > { %v2897_v6 = vpop.eup %2896 }
 0x5f6   : > { %v1855_v61 = vmul.f32 %v2897_v6, %v4110_v9  ;;  %v2561_v9 = vpack.i.bf16 %v3948_v0, %v3934_v25  ;;  %v1451_v26 = vpop.xlane.xlu1 %1450  ;;  %v4398_v25 = vpack.i.bf16 %v3998_v27, %v3995_v56 }
 0x5f7   : > { %v2899_v48 = vpop.eup %2898  ;;  %2900 = vrcp.f32 %v1451_v26 }
 0x5f8   : > { %v1856_v8 = vmul.f32 %v2899_v48, %v4112_v37  ;;  %v2591_v37 = vpack.i.bf16 %v3968_v17, %v3965_v5  ;;  %v1820_v5 = vpop.xlane.xlu2 %1819 }
 0x5f9   : > { %v1911_v29 = vpop.f32.mrf.mxu0 }
 0x5fa   : > { %v1867_v62 = vpack.c.bf16 %v1856_v8, %v1855_v61  ;;  %v2571_v7 = vpack.i.bf16 %v1911_v29, %v1909_v33 }
 0x5fc   : > { %1923 = vmatmul.bf16.gmra.mxu0 %v1867_v62 }
 0x5fd   : > { %2557 = vrot.lane.b32.xlu2 %v2556_v16, %s2980_s29  ;;  %v2901_v17 = vpop.eup %2900 }
 0x5fe   : > { %v1487_v2 = vmul.f32 %v2901_v17, %v4116_v42 }
 0x600   : > { %2547 = vrot.lane.b32.xlu0 %v2546_v23, %s2981_s30 }
 0x605   : > { %2577 = vrot.lane.b32.xlu2 %v2576_v28, %s2981_s30 }
 0x608   : > { %2562 = vrot.lane.b32.xlu0 %v2561_v9, %s2981_s30 }
 0x60d   : > { %2592 = vrot.lane.b32.xlu2 %v2591_v37, %s2981_s30 }
 0x615   : > { %2607 = vrot.lane.b32.xlu2 %v4397_v58, %s2981_s30 }
 0x61b   : > { %v1449_v57 = vpop.xlane.xlu0 %1448 }
 0x61c   : > { %2902 = vrcp.f32 %v1449_v57 }
 0x61d   : > { %2622 = vrot.lane.b32.xlu2 %v4398_v25, %s2981_s30  ;;  %v1533_v0 = vpop.f32.mrf.mxu1  ;;  %2904 = vrcp.f32 %v1820_v5 }
 0x622   : > { %v2903_v49 = vpop.eup %2902 }
 0x623   : > { %v1822_v30 = vpop.xlane.xlu0 %1821  ;;  %v1486_v19 = vmul.f32 %v2903_v49, %v4126_v50  ;;  %v2905_v13 = vpop.eup %2904 }
 0x624   : > { %2906 = vrcp.f32 %v1822_v30  ;;  %v1857_v50 = vmul.f32 %v2905_v13, %v4118_v52 }
 0x625   : > { %2637 = vrot.lane.b32.xlu2 %v4399_v44, %s2981_s30  ;;  %v1535_v11 = vpop.f32.mrf.mxu1  ;;  %v1497_v56 = vpack.c.bf16 %v1487_v2, %v1486_v19 }
 0x626   : > { %v2551_v27 = vpack.i.bf16 %v1535_v11, %v1533_v0 }
 0x627   : > { %1557 = vmatmul.bf16.gmra.mxu1 %v1497_v56 }
 0x628   : > { %2552 = vrot.lane.b32.xlu1 %v2551_v27, %s2982_s7  ;;  %v2491_v27 = vld [vmem:[%s4381_s3] sm:$0xff] }
 0x62a   : > { %v2907_v4 = vpop.eup %2906 }
 0x62b   : > { %v1858_v42 = vmul.f32 %v2907_v4, %v4129_v47 }
 0x62d   : > { %2652 = vrot.lane.b32.xlu2 %v4400_v63, %s2981_s30  ;;  %v1868_v45 = vpack.c.bf16 %v1858_v42, %v1857_v50 }
 0x62f   : > { %1928 = vmatmul.bf16.gmra.mxu0 %v1868_v45 }
 0x630   : > { %2572 = vrot.lane.b32.xlu1 %v2571_v7, %s2980_s29 }
 0x634   : > { %v1455_v43 = vpop.xlane.xlu2 %1454 }
 0x635   : > { %v1914_v22 = vpop.f32.mrf.mxu0  ;;  %2908 = vrcp.f32 %v1455_v43 }
 0x63b   : > { %v2909_v47 = vpop.eup %2908 }
 0x63c   : > { %v1489_v60 = vmul.f32 %v2909_v47, %v4135_v31 }
 0x63d   : > { %v1916_v51 = vpop.f32.mrf.mxu0 }
 0x63e   : > { %v2586_v12 = vpack.i.bf16 %v1916_v51, %v1914_v22 }
 0x63f   : > { %v1453_v10 = vpop.xlane.xlu1 %1452 }
 0x640   : > { %2910 = vrcp.f32 %v1453_v10  ;;  %2587 = vrot.lane.b32.xlu1 %v2586_v12, %s2980_s29  ;;  %v1824_v32 = vpop.xlane.xlu0 %1823 }
 0x641   : > { %v1538_v52 = vpop.f32.mrf.mxu1  ;;  %2912 = vrcp.f32 %v1824_v32 }
 0x646   : > { %v2911_v21 = vpop.eup %2910 }
 0x647   : > { %v1488_v38 = vmul.f32 %v2911_v21, %v4142_v3  ;;  %v2913_v61 = vpop.eup %2912 }
 0x648   : > { %v1859_v62 = vmul.f32 %v2913_v61, %v4144_v15 }
 0x649   : > { %v1540_v39 = vpop.f32.mrf.mxu1  ;;  %v1498_v14 = vpack.c.bf16 %v1489_v60, %v1488_v38 }
 0x64a   : > { %v2566_v59 = vpack.i.bf16 %v1540_v39, %v1538_v52 }
 0x64b   : > { %1562 = vmatmul.bf16.gmra.mxu1 %v1498_v14 }
 0x64c   : > { %2567 = vrot.lane.b32.xlu0 %v2566_v59, %s2982_s7 }
 0x64f   : > { %v1826_v6 = vpop.xlane.xlu1 %1825 }
 0x650   : > { %v1457_v48 = vpop.xlane.xlu2 %1456  ;;  %2914 = vrcp.f32 %v1826_v6 }
 0x651   : > { %v1543_v46 = vpop.f32.mrf.mxu1 }
 0x656   : > { %v2915_v8 = vpop.eup %2914 }
 0x657   : > { %v1860_v3 = vmul.f32 %v2915_v8, %v4154_v55  ;;  %v1828_v16 = vpop.xlane.xlu1 %1827 }
 0x658   : > { %v1830_v31 = vpop.xlane.xlu2 %1829  ;;  %2916 = vrcp.f32 %v1828_v16 }
 0x659   : > { %v1545_v23 = vpop.f32.mrf.mxu1  ;;  %v1869_v28 = vpack.c.bf16 %v1860_v3, %v1859_v62  ;;  %2918 = vrcp.f32 %v1830_v31 }
 0x65a   : > { %v2581_v9 = vpack.i.bf16 %v1545_v23, %v1543_v46  ;;  %2920 = vrcp.f32 %v1457_v48 }
 0x65b   : > { %1933 = vmatmul.bf16.gmra.mxu0 %v1869_v28 }
 0x65c   : > { %2582 = vrot.lane.b32.xlu0 %v2581_v9, %s2982_s7 }
 0x65e   : > { %v2917_v58 = vpop.eup %2916 }
 0x65f   : > { %v1459_v37 = vpop.xlane.xlu0 %1458  ;;  %v2919_v57 = vpop.eup %2918  ;;  %v1861_v55 = vmul.f32 %v2917_v58, %v4165_v20 }
 0x660   : > { %2922 = vrcp.f32 %v1459_v37  ;;  %v2921_v15 = vpop.eup %2920  ;;  %v1862_v0 = vmul.f32 %v2919_v57, %v4167_v53  ;;  %v2492_v53 = vld [vmem:[%s4381_s3 + $0x8] sm:$0xff]  ;;  %v2558_v63 = vpop.permute.xlu2 %2557 }
 0x661   : > { %v1548_v26 = vpop.f32.mrf.mxu1  ;;  %v1490_v17 = vmul.f32 %v2921_v15, %v4156_v40  ;;  %2244 = vmatpush.bf16.msra.mxu2 %v2492_v53  ;;  %v2560_v43 = vunpack.i.h.bf16 %v2558_v63  ;;  %v2559_v51 = vunpack.i.l.bf16 %v2558_v63 }
 0x662   : > { %v1919_v25 = vpop.f32.mrf.mxu0  ;;  %v1870_v19 = vpack.c.bf16 %v1862_v0, %v1861_v55 }
 0x665   : > { %2245 = vmatpush.bf16.msra.mxu2 %v2491_v27 }
 0x666   : > { %v2923_v5 = vpop.eup %2922 }
 0x667   : > { %v1491_v33 = vmul.f32 %v2923_v5, %v4171_v35 }
 0x668   : > { %v2578_v15 = vpop.permute.xlu2 %2577 }
 0x669   : > { %v1550_v49 = vpop.f32.mrf.mxu1  ;;  %v1499_v30 = vpack.c.bf16 %v1491_v33, %v1490_v17  ;;  %v2580_v55 = vunpack.i.h.bf16 %v2578_v15 }
 0x66a   : > { %v2596_v2 = vpack.i.bf16 %v1550_v49, %v1548_v26  ;;  %v1921_v44 = vpop.f32.mrf.mxu0  ;;  %v4401_v49 = vld [vmem:[#allocation5_spill] sm:$0xff] }
 0x66b   : > { %v2601_v11 = vpack.i.bf16 %v1921_v44, %v1919_v25  ;;  %1567 = vmatmul.bf16.gmra.mxu1 %v1499_v30  ;;  %1938 = vmatmul.bf16.gmra.mxu0 %v1870_v19  ;;  %v2141_v33 = vsel %vm508_vm1, %v3908_v36, %v2580_v55 }
 0x66c   : > { %2597 = vrot.lane.b32.xlu0 %v2596_v2, %s2982_s7 }
 0x66d   : > { %2602 = vrot.lane.b32.xlu1 %v2601_v11, %s2980_s29 }
 0x670   : > { %v2593_v27 = vpop.permute.xlu2 %2592 }
 0x671   : > { %v1553_v20 = vpop.f32.mrf.mxu1 }
 0x672   : > { %v2548_v29 = vpop.permute.xlu0 %2547 }
 0x673   : > { %v2550_v50 = vunpack.i.h.bf16 %v2548_v29  ;;  %v2549_v42 = vunpack.i.l.bf16 %v2548_v29 }
 0x675   : > { %v2137_v12 = vsel %vm508_vm1, %v3860_v41, %v2550_v50  ;;  %v2136_v10 = vsel %vm508_vm1, %v3848_v24, %v2549_v42 }
 0x679   : > { %v1555_v40 = vpop.f32.mrf.mxu1  ;;  %v1924_v35 = vpop.f32.mrf.mxu0 }
 0x67a   : > { %v2611_v56 = vpack.i.bf16 %v1555_v40, %v1553_v20  ;;  %v2563_v6 = vpop.permute.xlu0 %2562 }
 0x67b   : > { %v2565_v48 = vunpack.i.h.bf16 %v2563_v6  ;;  %v2564_v46 = vunpack.i.l.bf16 %v2563_v6 }
 0x67c   : > { %2612 = vrot.lane.b32.xlu0 %v2611_v56, %s2982_s7 }
 0x67d   : > { %v2139_v16 = vsel %vm508_vm1, %v3881_v54, %v2565_v48  ;;  %v2138_v31 = vsel %vm508_vm1, %v3869_v34, %v2564_v46  ;;  %v2579_v54 = vunpack.i.l.bf16 %v2578_v15 }
 0x67f   : > { %v2140_v30 = vsel %vm508_vm1, %v4401_v49, %v2579_v54  ;;  %v4404_v49 = vld [vmem:[#allocation9_spill] sm:$0xff] }
 0x681   : > { %v1926_v13 = vpop.f32.mrf.mxu0 }
 0x682   : > { %v2616_v4 = vpack.i.bf16 %v1926_v13, %v1924_v35  ;;  %v2595_v13 = vunpack.i.h.bf16 %v2593_v27 }
 0x684   : > { %2617 = vrot.lane.b32.xlu1 %v2616_v4, %s2980_s29  ;;  %v2594_v4 = vunpack.i.l.bf16 %v2593_v27 }
 0x69a   : > { %v2553_v45 = vpop.permute.xlu1 %2552 }
 0x69b   : > { %v2555_v7 = vunpack.i.h.bf16 %v2553_v45  ;;  %v2554_v22 = vunpack.i.l.bf16 %v2553_v45  ;;  %v2143_v45 = vsel %vm508_vm1, %v4197_v1, %v2595_v13 }
 0x69d   : > { %v2154_v52 = vsel %vm2152_vm2, %v2137_v12, %v2555_v7  ;;  %v2153_v47 = vsel %vm2152_vm2, %v2136_v10, %v2554_v22  ;;  %v2142_v7 = vsel %vm508_vm1, %v4190_v18, %v2594_v4  ;;  %v2608_v18 = vpop.permute.xlu2 %2607 }
 0x69e   : > { %v2171_v21 = vsel %vm2169_vm3, %v2154_v52, %v2560_v43  ;;  %v2170_v38 = vsel %vm2169_vm3, %v2153_v47, %v2559_v51  ;;  %v2610_v6 = vunpack.i.h.bf16 %v2608_v18 }
 0x69f   : > { %v2186_v60 = vpack.c.bf16 %v2171_v21, %v2170_v38 }
 0x6a1   : > { %2469 = vmatmul.msk.bf16.vlgmr.msra.gmra.mxu2 %vm346_vm0, %v2186_v60 }
 0x6a2   : > { %v2573_v61 = vpop.permute.xlu1 %2572 }
 0x6a3   : > { %v2575_v23 = vunpack.i.h.bf16 %v2573_v61  ;;  %v2574_v28 = vunpack.i.l.bf16 %v2573_v61 }
 0x6a4   : > { %v1558_v39 = vpop.f32.mrf.mxu1 }
 0x6ac   : > { %v1560_v14 = vpop.f32.mrf.mxu1  ;;  %v1929_v59 = vpop.f32.mrf.mxu0 }
 0x6ad   : > { %v2626_v32 = vpack.i.bf16 %v1560_v14, %v1558_v39 }
 0x6af   : > { %2627 = vrot.lane.b32.xlu0 %v2626_v32, %s2982_s7 }
 0x6b2   : > { %v2588_v0 = vpop.permute.xlu1 %2587 }
 0x6b3   : > { %v2590_v19 = vunpack.i.h.bf16 %v2588_v0  ;;  %v2589_v2 = vunpack.i.l.bf16 %v2588_v0 }
 0x6b4   : > { %v1931_v41 = vpop.f32.mrf.mxu0 }
 0x6b5   : > { %v2631_v24 = vpack.i.bf16 %v1931_v41, %v1929_v59 }
 0x6b7   : > { %2632 = vrot.lane.b32.xlu1 %v2631_v24, %s2980_s29  ;;  %v2609_v24 = vunpack.i.l.bf16 %v2608_v18 }
 0x6be   : > { %v2568_v8 = vpop.permute.xlu0 %2567 }
 0x6bf   : > { %v2570_v62 = vunpack.i.h.bf16 %v2568_v8  ;;  %v2569_v3 = vunpack.i.l.bf16 %v2568_v8  ;;  %v4402_v8 = vld [vmem:[#allocation7_spill] sm:$0xff] }
 0x6c1   : > { %v2155_v9 = vsel %vm2152_vm2, %v2138_v31, %v2569_v3  ;;  %v2156_v37 = vsel %vm2152_vm2, %v2139_v16, %v2570_v62  ;;  %v2145_v62 = vsel %vm508_vm1, %v4402_v8, %v2610_v6  ;;  %v4403_v3 = vld [vmem:[#allocation6_spill] sm:$0xff] }
 0x6c2   : > { %v2172_v58 = vsel %vm2169_vm3, %v2155_v9, %v2574_v28  ;;  %v2173_v26 = vsel %vm2169_vm3, %v2156_v37, %v2575_v23  ;;  %v2144_v16 = vsel %vm508_vm1, %v4403_v3, %v2609_v24 }
 0x6c3   : > { %v2187_v57 = vpack.c.bf16 %v2173_v26, %v2172_v58 }
 0x6c5   : > { %2470 = vmatmul.msk.bf16.gmra.mxu2 %vm346_vm0, %v2187_v57  ;;  %v4293_v57 = vld [vmem:[%s4382_s4] ss:$0 sm:$0xff] }
 0x6c8   : > { %v1563_v25 = vpop.f32.mrf.mxu1 }
 0x6ce   : > { %v2583_v5 = vpop.permute.xlu0 %2582 }
 0x6cf   : > { %v2585_v34 = vunpack.i.h.bf16 %v2583_v5  ;;  %v2584_v17 = vunpack.i.l.bf16 %v2583_v5 }
 0x6d0   : > { %v1565_v44 = vpop.f32.mrf.mxu1 }
 0x6d1   : > { %v2157_v11 = vsel %vm2152_vm2, %v2140_v30, %v2584_v17  ;;  %v2158_v20 = vsel %vm2152_vm2, %v2141_v33, %v2585_v34  ;;  %v2641_v53 = vpack.i.bf16 %v1565_v44, %v1563_v25  ;;  %v2623_v25 = vpop.permute.xlu2 %2622 }
 0x6d2   : > { %v2174_v40 = vsel %vm2169_vm3, %v2157_v11, %v2589_v2  ;;  %v2175_v35 = vsel %vm2169_vm3, %v2158_v20, %v2590_v19  ;;  %v2625_v0 = vunpack.i.h.bf16 %v2623_v25  ;;  %v2624_v5 = vunpack.i.l.bf16 %v2623_v25  ;;  %v4405_v19 = vld [vmem:[#allocation8_spill] sm:$0xff] }
 0x6d3   : > { %2642 = vrot.lane.b32.xlu0 %v2641_v53, %s2982_s7  ;;  %v2188_v56 = vpack.c.bf16 %v2175_v35, %v2174_v40 }
 0x6d4   : > { %v2147_v30 = vsel %vm508_vm1, %v4404_v49, %v2625_v0  ;;  %v2146_v2 = vsel %vm508_vm1, %v4405_v19, %v2624_v5 }
 0x6d5   : > { %2471 = vmatmul.msk.bf16.gmra.mxu2 %vm346_vm0, %v2188_v56 }
 0x6d8   : > { %v1934_v36 = vpop.f32.mrf.mxu0 }
 0x6de   : > { %v2598_v29 = vpop.permute.xlu0 %2597 }
 0x6df   : > { %v2600_v50 = vunpack.i.h.bf16 %v2598_v29  ;;  %v2599_v42 = vunpack.i.l.bf16 %v2598_v29  ;;  %v2603_v63 = vpop.permute.xlu1 %2602  ;;  %v2638_v29 = vpop.permute.xlu2 %2637 }
 0x6e0   : > { %v2605_v22 = vunpack.i.h.bf16 %v2603_v63  ;;  %v2604_v43 = vunpack.i.l.bf16 %v2603_v63  ;;  %v1936_v51 = vpop.f32.mrf.mxu0 }
 0x6e1   : > { %v2159_v12 = vsel %vm2152_vm2, %v2142_v7, %v2599_v42  ;;  %v2160_v10 = vsel %vm2152_vm2, %v2143_v45, %v2600_v50  ;;  %v2646_v52 = vpack.i.bf16 %v1936_v51, %v1934_v36  ;;  %v2640_v45 = vunpack.i.h.bf16 %v2638_v29 }
 0x6e2   : > { %v2177_v47 = vsel %vm2169_vm3, %v2160_v10, %v2605_v22  ;;  %v2176_v21 = vsel %vm2169_vm3, %v2159_v12, %v2604_v43  ;;  %v2639_v7 = vunpack.i.l.bf16 %v2638_v29  ;;  %v4406_v12 = vld [vmem:[#allocation11_spill] sm:$0xff] }
 0x6e3   : > { %v2189_v38 = vpack.c.bf16 %v2177_v47, %v2176_v21  ;;  %2647 = vrot.lane.b32.xlu1 %v2646_v52, %s2980_s29  ;;  %v2149_v10 = vsel %vm508_vm1, %v4406_v12, %v2640_v45  ;;  %v4407_v52 = vld [vmem:[#allocation10_spill] sm:$0xff] }
 0x6e4   : > { %v2148_v47 = vsel %vm508_vm1, %v4407_v52, %v2639_v7 }
 0x6e5   : > { %2472 = vmatmul.msk.bf16.gmra.mxu2 %vm346_vm0, %v2189_v38 }
 0x6e8   : > { %v1568_v1 = vpop.f32.mrf.mxu1  ;;  %v1939_v60 = vpop.f32.mrf.mxu0 }
 0x6ee   : > { %v2613_v59 = vpop.permute.xlu0 %2612 }
 0x6ef   : > { %v2615_v48 = vunpack.i.h.bf16 %v2613_v59  ;;  %v2614_v46 = vunpack.i.l.bf16 %v2613_v59 }
 0x6f0   : > { %v1570_v39 = vpop.f32.mrf.mxu1  ;;  %v1941_v14 = vpop.f32.mrf.mxu0 }
 0x6f1   : > { %v2656_v32 = vpack.i.bf16 %v1570_v39, %v1568_v1  ;;  %v2661_v41 = vpack.i.bf16 %v1941_v14, %v1939_v60  ;;  %v2161_v28 = vsel %vm2152_vm2, %v2144_v16, %v2614_v46  ;;  %v2162_v9 = vsel %vm2152_vm2, %v2145_v62, %v2615_v48 }
 0x6f3   : > { %2657 = vrot.lane.b32.xlu0 %v2656_v32, %s2982_s7  ;;  %2662 = vrot.lane.b32.xlu1 %v2661_v41, %s2980_s29  ;;  %v2653_v41 = vpop.permute.xlu2 %2652 }
 0x6f4   : > { %v2655_v48 = vunpack.i.h.bf16 %v2653_v41  ;;  %v2654_v46 = vunpack.i.l.bf16 %v2653_v41 }
 0x6f6   : > { %v2618_v61 = vpop.permute.xlu1 %2617 }
 0x6f7   : > { %v2620_v31 = vunpack.i.h.bf16 %v2618_v61  ;;  %v2619_v23 = vunpack.i.l.bf16 %v2618_v61 }
 0x6f9   : > { %v2179_v37 = vsel %vm2169_vm3, %v2162_v9, %v2620_v31  ;;  %v2178_v58 = vsel %vm2169_vm3, %v2161_v28, %v2619_v23  ;;  %v4408_v23 = vld [vmem:[#allocation13_spill] sm:$0xff]  ;;  %v4409_v9 = vld [vmem:[#allocation12_spill] sm:$0xff] }
 0x6fa   : > { %v2190_v26 = vpack.c.bf16 %v2179_v37, %v2178_v58  ;;  %v2151_v28 = vsel %vm508_vm1, %v4408_v23, %v2655_v48  ;;  %v2150_v37 = vsel %vm508_vm1, %v4409_v9, %v2654_v46 }
 0x6fc   : > { %2473 = vmatmul.msk.bf16.gmra.mxu2 %vm346_vm0, %v2190_v26 }
 0x721   : > { %v2628_v15 = vpop.permute.xlu0 %2627 }
 0x722   : > { %v2630_v34 = vunpack.i.h.bf16 %v2628_v15  ;;  %v2629_v17 = vunpack.i.l.bf16 %v2628_v15 }
 0x724   : > { %v2247_v55 = vpop.f32.mrf.mxu2  ;;  %v2164_v20 = vsel %vm2152_vm2, %v2147_v30, %v2630_v34  ;;  %v2163_v53 = vsel %vm2152_vm2, %v2146_v2, %v2629_v17 }
 0x725   : > { %v2248_v54 = vadd.f32 %v4293_v57, %v2247_v55 }
 0x727   : > { %2287 = vst.msk [vmem:[%s4298_s17] sm:$0xff] %vm346_vm0, %v2248_v54 }
 0x729   : > { %v2633_v33 = vpop.permute.xlu1 %2632 }
 0x72a   : > { %v2635_v44 = vunpack.i.h.bf16 %v2633_v33  ;;  %v2634_v11 = vunpack.i.l.bf16 %v2633_v33 }
 0x72c   : > { %v2181_v40 = vsel %vm2169_vm3, %v2164_v20, %v2635_v44  ;;  %v2180_v35 = vsel %vm2169_vm3, %v2163_v53, %v2634_v11  ;;  %v2249_v56 = vpop.f32.mrf.mxu2 }
 0x72d   : > { %v2191_v36 = vpack.c.bf16 %v2181_v40, %v2180_v35  ;;  %v2250_v27 = vadd.f32 %v4293_v57, %v2249_v56 }
 0x72f   : > { %2288 = vst.msk [vmem:[%s4298_s17 + $0x8] sm:$0xff] %vm346_vm0, %v2250_v27  ;;  %2474 = vmatmul.msk.bf16.gmra.mxu2 %vm346_vm0, %v2191_v36 }
 0x745   : > { %v2643_v50 = vpop.permute.xlu0 %2642 }
 0x746   : > { %v2645_v22 = vunpack.i.h.bf16 %v2643_v50  ;;  %v2644_v43 = vunpack.i.l.bf16 %v2643_v50 }
 0x748   : > { %v2252_v13 = vpop.f32.mrf.mxu2  ;;  %v2166_v1 = vsel %vm2152_vm2, %v2149_v10, %v2645_v22  ;;  %v2165_v60 = vsel %vm2152_vm2, %v2148_v47, %v2644_v43 }
 0x749   : > { %v2253_v4 = vadd.f32 %v4293_v57, %v2252_v13 }
 0x74b   : > { %2289 = vst.msk [vmem:[%s4298_s17 + $0x10] sm:$0xff] %vm346_vm0, %v2253_v4 }
 0x750   : > { %v2254_v42 = vpop.f32.mrf.mxu2 }
 0x751   : > { %v2255_v63 = vadd.f32 %v4293_v57, %v2254_v42 }
 0x753   : > { %2290 = vst.msk [vmem:[%s4298_s17 + $0x18] sm:$0xff] %vm346_vm0, %v2255_v63 }
 0x755   : > { %v2648_v51 = vpop.permute.xlu1 %2647 }
 0x756   : > { %v2650_v21 = vunpack.i.h.bf16 %v2648_v51  ;;  %v2649_v38 = vunpack.i.l.bf16 %v2648_v51 }
 0x758   : > { %v2183_v18 = vsel %vm2169_vm3, %v2166_v1, %v2650_v21  ;;  %v2182_v39 = vsel %vm2169_vm3, %v2165_v60, %v2649_v38  ;;  %v2257_v14 = vpop.f32.mrf.mxu2 }
 0x759   : > { %v2192_v59 = vpack.c.bf16 %v2183_v18, %v2182_v39  ;;  %v2258_v32 = vadd.f32 %v4293_v57, %v2257_v14 }
 0x75b   : > { %2291 = vst.msk [vmem:[%s4298_s17 + $0x20] sm:$0xff] %vm346_vm0, %v2258_v32  ;;  %2475 = vmatmul.msk.bf16.gmra.mxu2 %vm346_vm0, %v2192_v59 }
 0x760   : > { %v2259_v6 = vpop.f32.mrf.mxu2 }
 0x761   : > { %v2260_v24 = vadd.f32 %v4293_v57, %v2259_v6 }
 0x763   : > { %2292 = vst.msk [vmem:[%s4298_s17 + $0x28] sm:$0xff] %vm346_vm0, %v2260_v24 }
 0x765   : > { %v2658_v61 = vpop.permute.xlu0 %2657  ;;  %v2663_v8 = vpop.permute.xlu1 %2662 }
 0x766   : > { %v2660_v62 = vunpack.i.h.bf16 %v2658_v61  ;;  %v2659_v3 = vunpack.i.l.bf16 %v2658_v61  ;;  %v2665_v16 = vunpack.i.h.bf16 %v2663_v8  ;;  %v2664_v31 = vunpack.i.l.bf16 %v2663_v8 }
 0x768   : > { %v2168_v58 = vsel %vm2152_vm2, %v2151_v28, %v2660_v62  ;;  %v2167_v26 = vsel %vm2152_vm2, %v2150_v37, %v2659_v3  ;;  %v2262_v25 = vpop.f32.mrf.mxu2 }
 0x769   : > { %v2185_v15 = vsel %vm2169_vm3, %v2168_v58, %v2665_v16  ;;  %v2184_v55 = vsel %vm2169_vm3, %v2167_v26, %v2664_v31  ;;  %v2263_v54 = vadd.f32 %v4293_v57, %v2262_v25 }
 0x76a   : > { %v2193_v0 = vpack.c.bf16 %v2185_v15, %v2184_v55 }
 0x76b   : > { %2293 = vst.msk [vmem:[%s4298_s17 + $0x30] sm:$0xff] %vm346_vm0, %v2263_v54 }
 0x76c   : > { %2476 = vmatmul.msk.bf16.gmra.mxu2 %vm346_vm0, %v2193_v0 }
 0x770   : > { %v2264_v5 = vpop.f32.mrf.mxu2 }
 0x771   : > { %v2265_v34 = vadd.f32 %v4293_v57, %v2264_v5 }
 0x773   : > { %2294 = vst.msk [vmem:[%s4298_s17 + $0x38] sm:$0xff] %vm346_vm0, %v2265_v34 }
 0x77f   : > { %v2267_v17 = vpop.f32.mrf.mxu2 }
 0x780   : > { %v2268_v33 = vadd.f32 %v4293_v57, %v2267_v17 }
 0x782   : > { %2295 = vst.msk [vmem:[%s4298_s17 + $0x40] sm:$0xff] %vm346_vm0, %v2268_v33 }
 0x787   : > { %v2269_v49 = vpop.f32.mrf.mxu2 }
 0x788   : > { %v2270_v30 = vadd.f32 %v4293_v57, %v2269_v49 }
 0x78a   : > { %2296 = vst.msk [vmem:[%s4298_s17 + $0x48] sm:$0xff] %vm346_vm0, %v2270_v30 }
 0x7b2   : > { %v2272_v19 = vpop.f32.mrf.mxu2 }
 0x7b3   : > { %v2273_v2 = vadd.f32 %v4293_v57, %v2272_v19 }
 0x7b5   : > { %2297 = vst.msk [vmem:[%s4298_s17 + $0x50] sm:$0xff] %vm346_vm0, %v2273_v2 }
 0x7ba   : > { %v2274_v44 = vpop.f32.mrf.mxu2 }
 0x7bb   : > { %v2275_v11 = vadd.f32 %v4293_v57, %v2274_v44 }
 0x7bd   : > { %2298 = vst.msk [vmem:[%s4298_s17 + $0x58] sm:$0xff] %vm346_vm0, %v2275_v11 }
 0x7de   : > { %v2277_v20 = vpop.f32.mrf.mxu2 }
 0x7df   : > { %v2278_v53 = vadd.f32 %v4293_v57, %v2277_v20 }
 0x7e1   : > { %2299 = vst.msk [vmem:[%s4298_s17 + $0x60] sm:$0xff] %vm346_vm0, %v2278_v53 }
 0x7e6   : > { %v2279_v40 = vpop.f32.mrf.mxu2 }
 0x7e7   : > { %v2280_v35 = vadd.f32 %v4293_v57, %v2279_v40 }
 0x7e9   : > { %2300 = vst.msk [vmem:[%s4298_s17 + $0x68] sm:$0xff] %vm346_vm0, %v2280_v35 }
 0x7ef   : > { %v2282_v56 = vpop.f32.mrf.mxu2 }
 0x7f0   : > { %v2283_v36 = vadd.f32 %v4293_v57, %v2282_v56 }
 0x7f2   : > { %2301 = vst.msk [vmem:[%s4298_s17 + $0x70] sm:$0xff] %vm346_vm0, %v2283_v36 }
 0x7f7   : > { %v2284_v27 = vpop.f32.mrf.mxu2 }
 0x7f8   : > { %v2285_v13 = vadd.f32 %v4293_v57, %v2284_v27 }
 0x7fa   : > { %2302 = vst.msk [vmem:[%s4298_s17 + $0x78] sm:$0xff] %vm346_vm0, %v2285_v13 }
 0x7fb PF: > { %s17_s21 = sadd.s32 1, %s2964_s21  }
 0x7fc   : > { %p14_p7 = scmp.ge.s32.totalorder %s17_s21, 4  }
 0x7fe   :  { %16 = sbr.rel (!%p14_p7) target bundleno = 1 (0x1), region = 82 }
 0x803   :  { %2324 = vsyncpa [#allocation3], 1 }
 0x804   :  { %2326 = vsyncpa [#allocation3 + $0x1], 1 }

</bundles_post_ra>
